<compile_context>
chip_gen: v7x
topology: tpu7x:2x2x1
jax: 0.10.0
libtpu: 0.0.40
codegen_flags: <defaults>
</compile_context>

<pallas_src>
import functools

import jax
import jax.numpy as jnp
from jax import lax
from jax.experimental import pallas as pl
from jax.experimental.pallas import tpu as pltpu


def _layernorm(x, w, eps=1e-5):
    # bias-free LayerNorm (nanoGPT config.bias = False), biased variance
    mu = jnp.mean(x, axis=-1, keepdims=True)
    xc = x - mu
    var = jnp.mean(xc * xc, axis=-1, keepdims=True)
    return xc * lax.rsqrt(var + eps) * w


# ----------------------------------------------------------------------------
# Fused kernel: grid = (batch_blocks, num_layers)
# ----------------------------------------------------------------------------
def _forecaster_kernel(nhead, rank, n_k, max_time_delta,
                       seq_ref, wpe_ref, sel_ref, rep_ref, cum_ref, tgt_ref,
                       w_in_ref, ln_ref, w_qkv_ref, w_op_ref, w_fc_ref,
                       w_mp_ref, lnf_ref, head_wd_ref, head_wt_ref,
                       head_b_ref, out_ref, x_scr):
    layer = pl.program_id(1)
    n_layer = pl.num_programs(1)

    f32 = jnp.float32
    bf16 = jnp.bfloat16

    T, D = x_scr.shape
    S = wpe_ref.shape[0]
    Bb = T // S
    hd = D // nhead
    D2 = head_wt_ref.shape[0]
    K = n_k
    R = rank
    BH = cum_ref.shape[1]
    scale = 1.0 / (hd ** 0.5)

    # ---- first layer step: build the (T, D) input embedding ----------------
    @pl.when(layer == 0)
    def _():
        x0 = jnp.dot(seq_ref[0], w_in_ref[...],
                     preferred_element_type=f32)                   # (T, D) f32
        x0 = (x0.reshape(Bb, S, D) + wpe_ref[...][None]).reshape(T, D)
        x_scr[...] = x0

    x = x_scr[...]                                                  # f32 stream

    # ---- transformer block `layer` ------------------------------------------
    lnw = ln_ref[0]                                                 # (2, D)
    xn = _layernorm(x, lnw[0:1])                                    # (T, D)

    # fused QKV projection: one wide matmul, bf16 operands, f32 accumulate
    qkv = jnp.dot(xn.astype(bf16), w_qkv_ref[0],
                  preferred_element_type=f32)                       # (T, 3D)
    qkv3 = qkv.reshape(Bb, S, 3 * D)

    # in-kernel causal mask (per batch element)
    ri = lax.broadcasted_iota(jnp.int32, (S, S), 0)
    ci = lax.broadcasted_iota(jnp.int32, (S, S), 1)
    mask = jnp.where(ci <= ri, 0.0, -1e30).astype(f32)[None]        # (1, S, S)

    heads = []
    for h in range(nhead):                                          # static
        qh = qkv3[:, :, h * hd:(h + 1) * hd].astype(bf16)           # (Bb,S,hd)
        kh = qkv3[:, :, D + h * hd:D + (h + 1) * hd].astype(bf16)
        vh = qkv3[:, :, 2 * D + h * hd:2 * D + (h + 1) * hd].astype(bf16)
        att = jnp.einsum('bqd,bkd->bqk', qh, kh,
                         preferred_element_type=f32) * scale        # (Bb,S,S)
        att = att + mask
        att = att - jnp.max(att, axis=-1, keepdims=True)
        p = jnp.exp(att)
        p = p / jnp.sum(p, axis=-1, keepdims=True)                  # exact
        yh = jnp.einsum('bqk,bkd->bqd', p.astype(bf16), vh,
                        preferred_element_type=f32)                 # (Bb,S,hd)
        heads.append(yh.reshape(T, hd))
    y = jnp.concatenate(heads, axis=-1).astype(bf16)                # (T, D)

    # fused attention output projection: one (T,D)@(D,D) matmul
    x = x + jnp.dot(y, w_op_ref[0], preferred_element_type=f32)

    # MLP (wide matmuls, bf16 operands)
    xn2 = _layernorm(x, lnw[1:2])
    h1 = jax.nn.gelu(jnp.dot(xn2.astype(bf16), w_fc_ref[0],
                             preferred_element_type=f32))           # (T, 4D)
    x = x + jnp.dot(h1.astype(bf16), w_mp_ref[0],
                    preferred_element_type=f32)
    x_scr[...] = x

    # ---- last layer step: final LN + gather + time-aware Fourier head ------
    @pl.when(layer == n_layer - 1)
    def _():
        hfin = _layernorm(x, lnf_ref[...])                          # (T, D)

        # causal-row gather as a tiny one-hot matmul (exact bf16 pick)
        ch = jnp.dot(sel_ref[0], hfin.astype(bf16),
                     preferred_element_type=f32)                    # (Bb, D)

        # unpack packed head parameters (static lane slices)
        wd = head_wd_ref[...]                                       # (D, 2D+4RK)
        w_out = wd[:, 0:D]
        w_c1 = wd[:, D:2 * D]
        w_fr = wd[:, 2 * D:2 * D + 4 * R * K]
        wt = head_wt_ref[...]                                       # (D2, D2+D)
        w_t2 = wt[:, 0:D2]
        w_c2 = wt[:, D2:D2 + D]
        hb = head_b_ref[...]                                        # (1, NB) f32
        o = 0
        b_out = hb[:, o:o + D]; o += D
        w_t1 = hb[:, o:o + D2]; o += D2
        b_t1 = hb[:, o:o + D2]; o += D2
        b_t2 = hb[:, o:o + D2]; o += D2
        b_c = hb[:, o:o + D]; o += D
        b_f = hb[:, o:o + 4 * R * K]

        base = jnp.dot(ch.astype(bf16), w_out,
                       preferred_element_type=f32) + b_out          # (Bb, D)
        # loop-invariant part of combine_proj, hoisted over the horizon axis
        base_c1 = jnp.dot(base.astype(bf16), w_c1,
                          preferred_element_type=f32)               # (Bb, D)
        # replicate per horizon -> rows ordered (b, h), b-major
        if Bb == 1:
            base_rep = jnp.broadcast_to(base_c1, (BH, D))
        else:
            base_rep = jnp.dot(rep_ref[...], base_c1.astype(bf16),
                               preferred_element_type=f32)          # (BH, D)

        # time encoder (Linear(1,D2) done as VPU broadcast; rest 2-D matmuls)
        t = jnp.clip(cum_ref[0] * (1.0 / max_time_delta), 0.0, 2.0)  # (BH, 1)
        t1 = jnp.maximum(t * w_t1 + b_t1, 0.0)                      # (BH, D2)
        tr = jnp.dot(t1.astype(bf16), w_t2,
                     preferred_element_type=f32) + b_t2             # (BH, D2)
        hz = base_rep + jnp.dot(tr.astype(bf16), w_c2,
                                preferred_element_type=f32) + b_c   # (BH, D)

        # ---- low-rank complex 2-D Fourier head -----------------------------
        # all 4*R coefficient projections fused into one wide matmul
        coefs = jnp.dot(hz.astype(bf16), w_fr,
                        preferred_element_type=f32) + b_f           # (BH, 4RK)

        tg = tgt_ref[0]                                             # (BH, 2)
        kidx = lax.broadcasted_iota(jnp.int32, (1, K), 1).astype(f32)
        xx = tg[:, 0:1]
        yy = tg[:, 1:2]
        cx = jnp.cos(jnp.pi * xx * kidx); sx = jnp.sin(jnp.pi * xx * kidx)
        cy = jnp.cos(jnp.pi * yy * kidx); sy = jnp.sin(jnp.pi * yy * kidx)

        def comp(c, r):  # static lane slice of the fused coefficient matmul
            off = (c * R + r) * K
            return coefs[:, off:off + K]                            # (BH, K)

        ure = [comp(0, r) for r in range(R)]
        uim = [comp(1, r) for r in range(R)]
        vre = [comp(2, r) for r in range(R)]
        vim = [comp(3, r) for r in range(R)]

        f_re = jnp.zeros((BH, 1), f32)
        f_im = jnp.zeros((BH, 1), f32)
        for r in range(R):
            ux_re = jnp.sum(ure[r] * cx - uim[r] * sx, -1, keepdims=True)
            ux_im = jnp.sum(ure[r] * sx + uim[r] * cx, -1, keepdims=True)
            vy_re = jnp.sum(vre[r] * cy - vim[r] * sy, -1, keepdims=True)
            vy_im = jnp.sum(vre[r] * sy + vim[r] * cy, -1, keepdims=True)
            f_re = f_re + ux_re * vy_re - ux_im * vy_im
            f_im = f_im + ux_re * vy_im + ux_im * vy_re

        # normaliser: int_{[-1,1]^2} |f|^2 = 4 * Re(sum_{r,s} <u_r,u_s*><v_r,v_s*>)
        zsum = jnp.zeros((BH, 1), f32)
        for r in range(R):
            for s in range(R):
                gu_re = jnp.sum(ure[r] * ure[s] + uim[r] * uim[s], -1, keepdims=True)
                gu_im = jnp.sum(uim[r] * ure[s] - ure[r] * uim[s], -1, keepdims=True)
                gv_re = jnp.sum(vre[r] * vre[s] + vim[r] * vim[s], -1, keepdims=True)
                gv_im = jnp.sum(vim[r] * vre[s] - vre[r] * vim[s], -1, keepdims=True)
                zsum = zsum + gu_re * gv_re - gu_im * gv_im
        zsum = jnp.maximum(zsum, 1e-12)

        pdf = (f_re * f_re + f_im * f_im) / (4.0 * zsum)
        pdf = jnp.maximum(pdf, 1e-37)            # keep log finite if pdf ~ 0
        out_ref[0] = jnp.log(pdf)                                   # (BH, 1)


# ----------------------------------------------------------------------------
# Parameter init (deterministic, synthetic; layouts pre-packed for the kernel)
# ----------------------------------------------------------------------------
def init_params(key, *, d_model, num_layers, nhead, seq_len, fourier_m,
                fourier_rank, input_dim=5):
    D, D2 = d_model, d_model // 2
    K, R = fourier_m + 1, fourier_rank
    L = num_layers
    ks = jax.random.split(key, 16)
    std = 0.02
    n = lambda k, s: jax.random.normal(k, s, jnp.float32) * std
    bf = jnp.bfloat16

    w_out = n(ks[8], (D, D))
    w_c1 = n(ks[11], (D, D))
    w_f = n(ks[13], (D, 4 * R * K))      # columns: [u_re r.. | u_im | v_re | v_im]
    w_t2 = n(ks[10], (D2, D2))
    w_c2 = n(ks[12], (D2, D))
    b_out = jnp.zeros((1, D), jnp.float32)
    w_t1 = n(ks[9], (1, D2))
    b_t1 = jnp.zeros((1, D2), jnp.float32)
    b_t2 = jnp.zeros((1, D2), jnp.float32)
    b_c = jnp.zeros((1, D), jnp.float32)
    b_f = n(ks[14], (1, 4 * R * K))

    return {
        # GPT (bias=False); Linear weights stored (in, out) so y = x @ W + b
        "w_in":  n(ks[0], (input_dim, D)),                 # f32 (tiny matmul)
        "wpe":   n(ks[1], (seq_len, D)),
        "ln":    jnp.ones((L, 2, D), jnp.float32),         # [ln1 | ln2]
        "lnf":   jnp.ones((1, D), jnp.float32),
        "w_qkv": n(ks[2], (L, D, 3 * D)).astype(bf),       # [Q | K | V], head-major
        "w_op":  n(ks[5], (L, D, D)).astype(bf),
        "w_fc":  n(ks[6], (L, D, 4 * D)).astype(bf),
        "w_mp":  n(ks[7], (L, 4 * D, D)).astype(bf),
        # packed head weights / biases
        "head_wd": jnp.concatenate([w_out, w_c1, w_f], axis=1).astype(bf),
        "head_wt": jnp.concatenate([w_t2, w_c2], axis=1).astype(bf),
        "head_b":  jnp.concatenate([b_out, w_t1, b_t1, b_t2, b_c, b_f], axis=1),
    }


def _pick_vmem_limit():
    try:
        cap = int(pltpu.get_tpu_info().vmem_capacity_bytes)
        return max(32 * 1024 * 1024, min((cap * 3) // 4, 96 * 1024 * 1024))
    except Exception:
        return 48 * 1024 * 1024


# ----------------------------------------------------------------------------
# Forward (JAX glue + one fused Pallas kernel)
# ----------------------------------------------------------------------------
def forecaster_forward(params, input_uv, centre_ll, target_uv,
                       causal_position, time_deltas, *, cfg):
    B, S, _ = input_uv.shape
    H = target_uv.shape[1]
    D = cfg["d_model"]
    L = cfg["num_layers"]
    nhead = cfg["nhead"]
    R = cfg["fourier_rank"]
    K = cfg["fourier_m"] + 1
    bf = jnp.bfloat16

    # batch blocking: target ~512 rows per layer step (weight-stream
    # amortisation) but keep >= 2 blocks on the parallel axis for v7x's 2 TCs.
    target_rows = 512
    Bb = max(1, min(B, target_rows // S))
    if B >= 2:
        Bb = min(Bb, (B + 1) // 2)
    nb = -(-B // Bb)
    B_pad = nb * Bb
    T = Bb * S
    BH = Bb * H

    def pad_b(x):
        if B_pad == B:
            return x
        return jnp.pad(x, [(0, B_pad - B)] + [(0, 0)] * (x.ndim - 1))

    # GPT input: [uv, centre (broadcast), time_delta] -> (nb, T, 5)
    ctx = jnp.broadcast_to(centre_ll[:, None, :], (B, S, 2))
    seq = jnp.concatenate([input_uv, ctx, time_deltas[:, :S, None]],
                          axis=-1).astype(jnp.float32)
    F = seq.shape[-1]
    seq = pad_b(seq).reshape(nb, T, F)

    # cumulative_time[b, h] = sum_{j = cp+1 .. cp+h} time_deltas[b, j]
    # (algebraically identical to the three PyTorch branches)
    Ttd = time_deltas.shape[1]
    idx = jnp.arange(Ttd)[None, None, :]
    cp = causal_position[:, None, None]
    hsteps = jnp.arange(H)[None, :, None]
    msk = (idx >= cp + 1) & (idx <= cp + hsteps)
    cum_time = jnp.sum(time_deltas[:, None, :] * msk, axis=-1)       # (B, H)
    cum = pad_b(cum_time).astype(jnp.float32).reshape(nb, BH, 1)

    tgt = pad_b(target_uv.astype(jnp.float32)).reshape(nb, BH, 2)

    # causal-row selection one-hot (per block): row b picks token b*S + cp
    cp_pad = pad_b(causal_position)
    tok_idx = (jnp.arange(B_pad) % Bb) * S + cp_pad
    sel = jax.nn.one_hot(tok_idx, T, dtype=bf).reshape(nb, Bb, T)

    # horizon-replication one-hot: row b*H+h -> base row b
    rep = jnp.repeat(jnp.eye(Bb, dtype=bf), H, axis=0)               # (BH, Bb)

    kernel = functools.partial(_forecaster_kernel, nhead, R, K,
                               float(cfg["max_time_delta"]))

    bmap3 = lambda b, l: (b, 0, 0)
    c2 = lambda b, l: (0, 0)
    lmap3 = lambda b, l: (l, 0, 0)

    out = pl.pallas_call(
        kernel,
        out_shape=jax.ShapeDtypeStruct((nb, BH, 1), jnp.float32),
        grid=(nb, L),
        in_specs=[
            pl.BlockSpec((1, T, F), bmap3),                  # seq
            pl.BlockSpec(params["wpe"].shape, c2),           # wpe (S, D)
            pl.BlockSpec((1, Bb, T), bmap3),                 # causal select
            pl.BlockSpec(rep.shape, c2),                     # horizon repeat
            pl.BlockSpec((1, BH, 1), bmap3),                 # cumulative time
            pl.BlockSpec((1, BH, 2), bmap3),                 # target_uv
            pl.BlockSpec(params["w_in"].shape, c2),
            pl.BlockSpec((1, 2, D), lmap3),                  # ln1|ln2 per layer
            pl.BlockSpec((1, D, 3 * D), lmap3),              # fused QKV
            pl.BlockSpec((1, D, D), lmap3),                  # attn out proj
            pl.BlockSpec((1, D, 4 * D), lmap3),              # MLP fc
            pl.BlockSpec((1, 4 * D, D), lmap3),              # MLP proj
            pl.BlockSpec(params["lnf"].shape, c2),
            pl.BlockSpec(params["head_wd"].shape, c2),       # w_out|w_c1|w_f
            pl.BlockSpec(params["head_wt"].shape, c2),       # w_t2|w_c2
            pl.BlockSpec(params["head_b"].shape, c2),        # packed biases
        ],
        out_specs=pl.BlockSpec((1, BH, 1), bmap3),
        scratch_shapes=[pltpu.VMEM((T, D), jnp.float32)],
        compiler_params=pltpu.CompilerParams(
            dimension_semantics=("parallel", "arbitrary"),
            vmem_limit_bytes=_pick_vmem_limit()),
    )(seq, params["wpe"], sel, rep, cum, tgt,
      params["w_in"], params["ln"], params["w_qkv"], params["w_op"],
      params["w_fc"], params["w_mp"], params["lnf"],
      params["head_wd"], params["head_wt"], params["head_b"])

    return out.reshape(B_pad, H)[:B]                                 # (B, H)


if __name__ == "__main__":
    cfg = dict(seq_len=8, d_model=32, nhead=4, num_layers=2,
               fourier_m=8, fourier_rank=2, max_time_delta=3600.0)
    B, H = 2, 3

    key = jax.random.PRNGKey(0)
    kp, k1, k2, k3, k4, k5 = jax.random.split(key, 6)
    params = init_params(kp, d_model=cfg["d_model"],
                         num_layers=cfg["num_layers"], nhead=cfg["nhead"],
                         seq_len=cfg["seq_len"], fourier_m=cfg["fourier_m"],
                         fourier_rank=cfg["fourier_rank"])

    input_uv = jax.random.normal(k1, (B, cfg["seq_len"], 2), jnp.float32)
    centre_ll = jax.random.normal(k2, (B, 2), jnp.float32)
    target_uv = jax.random.uniform(k3, (B, H, 2), jnp.float32,
                                   minval=-1.0, maxval=1.0)
    causal_position = jax.random.randint(k4, (B,), 0, cfg["seq_len"],
                                         dtype=jnp.int32)
    time_deltas = jax.random.uniform(k5, (B, cfg["seq_len"] + H - 1),
                                     jnp.float32, minval=0.0, maxval=600.0)

    log_probs = forecaster_forward(params, input_uv, centre_ll, target_uv,
                                   causal_position, time_deltas, cfg=cfg)
    jax.block_until_ready(log_probs)
    assert log_probs.shape == (B, H) and log_probs.dtype == jnp.float32
    assert bool(jnp.all(jnp.isfinite(log_probs)))
    print("KERNEL_OK")
</pallas_src>

<mosaic_0001>
module attributes {stable_mosaic.version = 11 : i64} {
  func.func @_forecaster_kernel(%arg0: i32, %arg1: i32, %arg2: memref<1x8x5xf32, #tpu.memory_space<vmem>>, %arg3: memref<8x32xf32, #tpu.memory_space<vmem>>, %arg4: memref<1x1x8xbf16, #tpu.memory_space<vmem>>, %arg5: memref<3x1xbf16, #tpu.memory_space<vmem>>, %arg6: memref<1x3x1xf32, #tpu.memory_space<vmem>>, %arg7: memref<1x3x2xf32, #tpu.memory_space<vmem>>, %arg8: memref<5x32xf32, #tpu.memory_space<vmem>>, %arg9: memref<1x2x32xf32, #tpu.memory_space<vmem>>, %arg10: memref<1x32x96xbf16, #tpu.memory_space<vmem>>, %arg11: memref<1x32x32xbf16, #tpu.memory_space<vmem>>, %arg12: memref<1x32x128xbf16, #tpu.memory_space<vmem>>, %arg13: memref<1x128x32xbf16, #tpu.memory_space<vmem>>, %arg14: memref<1x32xf32, #tpu.memory_space<vmem>>, %arg15: memref<32x136xbf16, #tpu.memory_space<vmem>>, %arg16: memref<16x48xbf16, #tpu.memory_space<vmem>>, %arg17: memref<1x184xf32, #tpu.memory_space<vmem>>, %arg18: memref<1x3x1xf32, #tpu.memory_space<vmem>>, %arg19: memref<8x32xf32, #tpu.memory_space<vmem>>) attributes {dimension_semantics = [#tpu.dimension_semantics<parallel>, #tpu.dimension_semantics<arbitrary>], iteration_bounds = array<i64: 2, 2>, scalar_prefetch = 0 : i64, scratch_operands = 1 : i64, tpu.core_type = #tpu.core_type<tc>, window_params = [{transform_indices = @transform_0, window_bounds = array<i64: 1, 8, 5>}, {pipeline_mode = #tpu.pipeline_mode<synchronous>, transform_indices = @transform_1, window_bounds = array<i64: 8, 32>}, {transform_indices = @transform_2, window_bounds = array<i64: 1, 1, 8>}, {pipeline_mode = #tpu.pipeline_mode<synchronous>, transform_indices = @transform_3, window_bounds = array<i64: 3, 1>}, {transform_indices = @transform_4, window_bounds = array<i64: 1, 3, 1>}, {transform_indices = @transform_5, window_bounds = array<i64: 1, 3, 2>}, {pipeline_mode = #tpu.pipeline_mode<synchronous>, transform_indices = @transform_6, window_bounds = array<i64: 5, 32>}, {transform_indices = @transform_7, window_bounds = array<i64: 1, 2, 32>}, {transform_indices = @transform_8, window_bounds = array<i64: 1, 32, 96>}, {transform_indices = @transform_9, window_bounds = array<i64: 1, 32, 32>}, {transform_indices = @transform_10, window_bounds = array<i64: 1, 32, 128>}, {transform_indices = @transform_11, window_bounds = array<i64: 1, 128, 32>}, {pipeline_mode = #tpu.pipeline_mode<synchronous>, transform_indices = @transform_12, window_bounds = array<i64: 1, 32>}, {pipeline_mode = #tpu.pipeline_mode<synchronous>, transform_indices = @transform_13, window_bounds = array<i64: 32, 136>}, {pipeline_mode = #tpu.pipeline_mode<synchronous>, transform_indices = @transform_14, window_bounds = array<i64: 16, 48>}, {pipeline_mode = #tpu.pipeline_mode<synchronous>, transform_indices = @transform_15, window_bounds = array<i64: 1, 184>}, {transform_indices = @transform_16, window_bounds = array<i64: 1, 3, 1>}]} {
    %c0_i32 = arith.constant 0 : i32
    %0 = arith.cmpi eq, %arg1, %c0_i32 : i32
    %1 = arith.extui %0 : i1 to i32
    %c0_i32_0 = arith.constant 0 : i32
    %2 = arith.cmpi ne, %1, %c0_i32_0 : i32
    scf.if %2 {
      %c0_59 = arith.constant 0 : index
      %c0_60 = arith.constant 0 : index
      %c0_61 = arith.constant 0 : index
      %176 = vector.load %arg2[%c0_59, %c0_60, %c0_61] : memref<1x8x5xf32, #tpu.memory_space<vmem>>, vector<1x8x5xf32>
      %177 = vector.shape_cast %176 : vector<1x8x5xf32> to vector<8x5xf32>
      %c0_62 = arith.constant 0 : index
      %c0_63 = arith.constant 0 : index
      %178 = vector.load %arg8[%c0_62, %c0_63] : memref<5x32xf32, #tpu.memory_space<vmem>>, vector<5x32xf32>
      %cst_64 = arith.constant dense<0.000000e+00> : vector<8x32xf32>
      %179 = tpu.matmul %177, %178, %cst_64 {dimension_numbers = #tpu.dot_dimension_numbers<[1], [0], [0], [1], [0, 0, 1, 1], [], []>} : vector<8x5xf32>, vector<5x32xf32>, vector<8x32xf32> -> vector<8x32xf32>
      %180 = vector.shape_cast %179 : vector<8x32xf32> to vector<1x8x32xf32>
      %c0_65 = arith.constant 0 : index
      %c0_66 = arith.constant 0 : index
      %181 = vector.load %arg3[%c0_65, %c0_66] : memref<8x32xf32, #tpu.memory_space<vmem>>, vector<8x32xf32>
      %182 = vector.shape_cast %181 : vector<8x32xf32> to vector<1x8x32xf32>
      %183 = arith.addf %180, %182 : vector<1x8x32xf32>
      %184 = vector.shape_cast %183 : vector<1x8x32xf32> to vector<8x32xf32>
      %c0_67 = arith.constant 0 : index
      %c0_68 = arith.constant 0 : index
      %185 = vector.load %arg19[%c0_67, %c0_68] : memref<8x32xf32, #tpu.memory_space<vmem>>, vector<8x32xf32>
      tpu.vector_store %arg19[%c0_67, %c0_68], %184 {strides = array<i32>} : memref<8x32xf32, #tpu.memory_space<vmem>>, vector<8x32xf32>,
    } else {
    }
    %c0 = arith.constant 0 : index
    %c0_1 = arith.constant 0 : index
    %3 = vector.load %arg19[%c0, %c0_1] : memref<8x32xf32, #tpu.memory_space<vmem>>, vector<8x32xf32>
    %c0_2 = arith.constant 0 : index
    %c0_3 = arith.constant 0 : index
    %c0_4 = arith.constant 0 : index
    %4 = vector.load %arg9[%c0_2, %c0_3, %c0_4] : memref<1x2x32xf32, #tpu.memory_space<vmem>>, vector<1x2x32xf32>
    %5 = vector.shape_cast %4 : vector<1x2x32xf32> to vector<2x32xf32>
    %6 = vector.extract_strided_slice %5 {offsets = [0, 0], sizes = [1, 32], strides = [1, 1]} : vector<2x32xf32> to vector<1x32xf32>
    %cst = arith.constant dense<0.000000e+00> : vector<8xf32>
    %7 = vector.multi_reduction <add>, %3, %cst [1] : vector<8x32xf32> to vector<8xf32>
    %8 = vector.shape_cast %7 : vector<8xf32> to vector<8x1xf32>
    %cst_5 = arith.constant 3.200000e+01 : f32
    %9 = vector.broadcast %cst_5 : f32 to vector<8x1xf32>
    %10 = arith.divf %8, %9 : vector<8x1xf32>
    %11 = vector.broadcast %10 : vector<8x1xf32> to vector<8x32xf32>
    %12 = arith.subf %3, %11 : vector<8x32xf32>
    %13 = arith.mulf %12, %12 : vector<8x32xf32>
    %cst_6 = arith.constant dense<0.000000e+00> : vector<8xf32>
    %14 = vector.multi_reduction <add>, %13, %cst_6 [1] : vector<8x32xf32> to vector<8xf32>
    %15 = vector.shape_cast %14 : vector<8xf32> to vector<8x1xf32>
    %cst_7 = arith.constant 3.200000e+01 : f32
    %16 = vector.broadcast %cst_7 : f32 to vector<8x1xf32>
    %17 = arith.divf %15, %16 : vector<8x1xf32>
    %cst_8 = arith.constant 9.99999974E-6 : f32
    %18 = vector.broadcast %cst_8 : f32 to vector<8x1xf32>
    %19 = arith.addf %17, %18 : vector<8x1xf32>
    %20 = math.rsqrt %19 : vector<8x1xf32>
    %21 = vector.broadcast %20 : vector<8x1xf32> to vector<8x32xf32>
    %22 = arith.mulf %12, %21 : vector<8x32xf32>
    %23 = vector.broadcast %6 : vector<1x32xf32> to vector<8x32xf32>
    %24 = arith.mulf %22, %23 : vector<8x32xf32>
    %25 = arith.truncf %24 : vector<8x32xf32> to vector<8x32xbf16>
    %c0_9 = arith.constant 0 : index
    %c0_10 = arith.constant 0 : index
    %c0_11 = arith.constant 0 : index
    %26 = vector.load %arg10[%c0_9, %c0_10, %c0_11] : memref<1x32x96xbf16, #tpu.memory_space<vmem>>, vector<1x32x96xbf16>
    %27 = vector.shape_cast %26 : vector<1x32x96xbf16> to vector<32x96xbf16>
    %cst_12 = arith.constant dense<0.000000e+00> : vector<8x96xf32>
    %28 = tpu.matmul %25, %27, %cst_12 {dimension_numbers = #tpu.dot_dimension_numbers<[1], [0], [0], [1], [0, 0, 1, 1], [], []>} : vector<8x32xbf16>, vector<32x96xbf16>, vector<8x96xf32> -> vector<8x96xf32>
    %29 = vector.shape_cast %28 : vector<8x96xf32> to vector<1x8x96xf32>
    %30 = tpu.iota {dimensions = array<i32: 0>} : vector<8x8xi32>
    %31 = tpu.iota {dimensions = array<i32: 1>} : vector<8x8xi32>
    %32 = arith.cmpi sle, %31, %30 : vector<8x8xi32>
    %cst_13 = arith.constant 0.000000e+00 : f32
    %cst_14 = arith.constant -1.000000e+30 : f32
    %33 = vector.broadcast %cst_13 : f32 to vector<8x8xf32>
    %34 = vector.broadcast %cst_14 : f32 to vector<8x8xf32>
    %35 = arith.select %32, %33, %34 : vector<8x8xi1>, vector<8x8xf32>
    %36 = vector.shape_cast %35 : vector<8x8xf32> to vector<1x8x8xf32>
    %37 = vector.extract_strided_slice %29 {offsets = [0, 0, 0], sizes = [1, 8, 8], strides = [1, 1, 1]} : vector<1x8x96xf32> to vector<1x8x8xf32>
    %38 = arith.truncf %37 : vector<1x8x8xf32> to vector<1x8x8xbf16>
    %39 = vector.extract_strided_slice %29 {offsets = [0, 0, 32], sizes = [1, 8, 8], strides = [1, 1, 1]} : vector<1x8x96xf32> to vector<1x8x8xf32>
    %40 = arith.truncf %39 : vector<1x8x8xf32> to vector<1x8x8xbf16>
    %41 = vector.extract_strided_slice %29 {offsets = [0, 0, 64], sizes = [1, 8, 8], strides = [1, 1, 1]} : vector<1x8x96xf32> to vector<1x8x8xf32>
    %42 = arith.truncf %41 : vector<1x8x8xf32> to vector<1x8x8xbf16>
    "tpu.trace_start"() <{level = 10 : i32, message = "bqd,bkd->bqk"}> : () -> ()
    %cst_15 = arith.constant dense<0.000000e+00> : vector<1x8x8xf32>
    %43 = tpu.matmul %38, %40, %cst_15 {dimension_numbers = #tpu.dot_dimension_numbers<[2], [2], [1], [1], [0, 0, 0, 1, 1, 1], [0], [0]>} : vector<1x8x8xbf16>, vector<1x8x8xbf16>, vector<1x8x8xf32> -> vector<1x8x8xf32>
    "tpu.trace_stop"() : () -> ()
    %cst_16 = arith.constant 0.353553385 : f32
    %44 = vector.broadcast %cst_16 : f32 to vector<1x8x8xf32>
    %45 = arith.mulf %43, %44 : vector<1x8x8xf32>
    %46 = arith.addf %45, %36 : vector<1x8x8xf32>
    %cst_17 = arith.constant dense<0xFF800000> : vector<1x8xf32>
    %47 = vector.multi_reduction <maximumf>, %46, %cst_17 [2] : vector<1x8x8xf32> to vector<1x8xf32>
    %48 = vector.shape_cast %47 : vector<1x8xf32> to vector<1x8x1xf32>
    %49 = vector.broadcast %48 : vector<1x8x1xf32> to vector<1x8x8xf32>
    %50 = arith.subf %46, %49 : vector<1x8x8xf32>
    %51 = math.exp %50 : vector<1x8x8xf32>
    %cst_18 = arith.constant dense<0.000000e+00> : vector<1x8xf32>
    %52 = vector.multi_reduction <add>, %51, %cst_18 [2] : vector<1x8x8xf32> to vector<1x8xf32>
    %53 = vector.shape_cast %52 : vector<1x8xf32> to vector<1x8x1xf32>
    %54 = vector.broadcast %53 : vector<1x8x1xf32> to vector<1x8x8xf32>
    %55 = arith.divf %51, %54 : vector<1x8x8xf32>
    %56 = arith.truncf %55 : vector<1x8x8xf32> to vector<1x8x8xbf16>
    "tpu.trace_start"() <{level = 10 : i32, message = "bqk,bkd->bqd"}> : () -> ()
    %cst_19 = arith.constant dense<0.000000e+00> : vector<1x8x8xf32>
    %57 = tpu.matmul %56, %42, %cst_19 {dimension_numbers = #tpu.dot_dimension_numbers<[2], [1], [1], [2], [0, 0, 0, 1, 1, 2], [0], [0]>} : vector<1x8x8xbf16>, vector<1x8x8xbf16>, vector<1x8x8xf32> -> vector<1x8x8xf32>
    "tpu.trace_stop"() : () -> ()
    %58 = vector.shape_cast %57 : vector<1x8x8xf32> to vector<8x8xf32>
    %59 = vector.extract_strided_slice %29 {offsets = [0, 0, 8], sizes = [1, 8, 8], strides = [1, 1, 1]} : vector<1x8x96xf32> to vector<1x8x8xf32>
    %60 = arith.truncf %59 : vector<1x8x8xf32> to vector<1x8x8xbf16>
    %61 = vector.extract_strided_slice %29 {offsets = [0, 0, 40], sizes = [1, 8, 8], strides = [1, 1, 1]} : vector<1x8x96xf32> to vector<1x8x8xf32>
    %62 = arith.truncf %61 : vector<1x8x8xf32> to vector<1x8x8xbf16>
    %63 = vector.extract_strided_slice %29 {offsets = [0, 0, 72], sizes = [1, 8, 8], strides = [1, 1, 1]} : vector<1x8x96xf32> to vector<1x8x8xf32>
    %64 = arith.truncf %63 : vector<1x8x8xf32> to vector<1x8x8xbf16>
    "tpu.trace_start"() <{level = 10 : i32, message = "bqd,bkd->bqk"}> : () -> ()
    %cst_20 = arith.constant dense<0.000000e+00> : vector<1x8x8xf32>
    %65 = tpu.matmul %60, %62, %cst_20 {dimension_numbers = #tpu.dot_dimension_numbers<[2], [2], [1], [1], [0, 0, 0, 1, 1, 1], [0], [0]>} : vector<1x8x8xbf16>, vector<1x8x8xbf16>, vector<1x8x8xf32> -> vector<1x8x8xf32>
    "tpu.trace_stop"() : () -> ()
    %cst_21 = arith.constant 0.353553385 : f32
    %66 = vector.broadcast %cst_21 : f32 to vector<1x8x8xf32>
    %67 = arith.mulf %65, %66 : vector<1x8x8xf32>
    %68 = arith.addf %67, %36 : vector<1x8x8xf32>
    %cst_22 = arith.constant dense<0xFF800000> : vector<1x8xf32>
    %69 = vector.multi_reduction <maximumf>, %68, %cst_22 [2] : vector<1x8x8xf32> to vector<1x8xf32>
    %70 = vector.shape_cast %69 : vector<1x8xf32> to vector<1x8x1xf32>
    %71 = vector.broadcast %70 : vector<1x8x1xf32> to vector<1x8x8xf32>
    %72 = arith.subf %68, %71 : vector<1x8x8xf32>
    %73 = math.exp %72 : vector<1x8x8xf32>
    %cst_23 = arith.constant dense<0.000000e+00> : vector<1x8xf32>
    %74 = vector.multi_reduction <add>, %73, %cst_23 [2] : vector<1x8x8xf32> to vector<1x8xf32>
    %75 = vector.shape_cast %74 : vector<1x8xf32> to vector<1x8x1xf32>
    %76 = vector.broadcast %75 : vector<1x8x1xf32> to vector<1x8x8xf32>
    %77 = arith.divf %73, %76 : vector<1x8x8xf32>
    %78 = arith.truncf %77 : vector<1x8x8xf32> to vector<1x8x8xbf16>
    "tpu.trace_start"() <{level = 10 : i32, message = "bqk,bkd->bqd"}> : () -> ()
    %cst_24 = arith.constant dense<0.000000e+00> : vector<1x8x8xf32>
    %79 = tpu.matmul %78, %64, %cst_24 {dimension_numbers = #tpu.dot_dimension_numbers<[2], [1], [1], [2], [0, 0, 0, 1, 1, 2], [0], [0]>} : vector<1x8x8xbf16>, vector<1x8x8xbf16>, vector<1x8x8xf32> -> vector<1x8x8xf32>
    "tpu.trace_stop"() : () -> ()
    %80 = vector.shape_cast %79 : vector<1x8x8xf32> to vector<8x8xf32>
    %81 = vector.extract_strided_slice %29 {offsets = [0, 0, 16], sizes = [1, 8, 8], strides = [1, 1, 1]} : vector<1x8x96xf32> to vector<1x8x8xf32>
    %82 = arith.truncf %81 : vector<1x8x8xf32> to vector<1x8x8xbf16>
    %83 = vector.extract_strided_slice %29 {offsets = [0, 0, 48], sizes = [1, 8, 8], strides = [1, 1, 1]} : vector<1x8x96xf32> to vector<1x8x8xf32>
    %84 = arith.truncf %83 : vector<1x8x8xf32> to vector<1x8x8xbf16>
    %85 = vector.extract_strided_slice %29 {offsets = [0, 0, 80], sizes = [1, 8, 8], strides = [1, 1, 1]} : vector<1x8x96xf32> to vector<1x8x8xf32>
    %86 = arith.truncf %85 : vector<1x8x8xf32> to vector<1x8x8xbf16>
    "tpu.trace_start"() <{level = 10 : i32, message = "bqd,bkd->bqk"}> : () -> ()
    %cst_25 = arith.constant dense<0.000000e+00> : vector<1x8x8xf32>
    %87 = tpu.matmul %82, %84, %cst_25 {dimension_numbers = #tpu.dot_dimension_numbers<[2], [2], [1], [1], [0, 0, 0, 1, 1, 1], [0], [0]>} : vector<1x8x8xbf16>, vector<1x8x8xbf16>, vector<1x8x8xf32> -> vector<1x8x8xf32>
    "tpu.trace_stop"() : () -> ()
    %cst_26 = arith.constant 0.353553385 : f32
    %88 = vector.broadcast %cst_26 : f32 to vector<1x8x8xf32>
    %89 = arith.mulf %87, %88 : vector<1x8x8xf32>
    %90 = arith.addf %89, %36 : vector<1x8x8xf32>
    %cst_27 = arith.constant dense<0xFF800000> : vector<1x8xf32>
    %91 = vector.multi_reduction <maximumf>, %90, %cst_27 [2] : vector<1x8x8xf32> to vector<1x8xf32>
    %92 = vector.shape_cast %91 : vector<1x8xf32> to vector<1x8x1xf32>
    %93 = vector.broadcast %92 : vector<1x8x1xf32> to vector<1x8x8xf32>
    %94 = arith.subf %90, %93 : vector<1x8x8xf32>
    %95 = math.exp %94 : vector<1x8x8xf32>
    %cst_28 = arith.constant dense<0.000000e+00> : vector<1x8xf32>
    %96 = vector.multi_reduction <add>, %95, %cst_28 [2] : vector<1x8x8xf32> to vector<1x8xf32>
    %97 = vector.shape_cast %96 : vector<1x8xf32> to vector<1x8x1xf32>
    %98 = vector.broadcast %97 : vector<1x8x1xf32> to vector<1x8x8xf32>
    %99 = arith.divf %95, %98 : vector<1x8x8xf32>
    %100 = arith.truncf %99 : vector<1x8x8xf32> to vector<1x8x8xbf16>
    "tpu.trace_start"() <{level = 10 : i32, message = "bqk,bkd->bqd"}> : () -> ()
    %cst_29 = arith.constant dense<0.000000e+00> : vector<1x8x8xf32>
    %101 = tpu.matmul %100, %86, %cst_29 {dimension_numbers = #tpu.dot_dimension_numbers<[2], [1], [1], [2], [0, 0, 0, 1, 1, 2], [0], [0]>} : vector<1x8x8xbf16>, vector<1x8x8xbf16>, vector<1x8x8xf32> -> vector<1x8x8xf32>
    "tpu.trace_stop"() : () -> ()
    %102 = vector.shape_cast %101 : vector<1x8x8xf32> to vector<8x8xf32>
    %103 = vector.extract_strided_slice %29 {offsets = [0, 0, 24], sizes = [1, 8, 8], strides = [1, 1, 1]} : vector<1x8x96xf32> to vector<1x8x8xf32>
    %104 = arith.truncf %103 : vector<1x8x8xf32> to vector<1x8x8xbf16>
    %105 = vector.extract_strided_slice %29 {offsets = [0, 0, 56], sizes = [1, 8, 8], strides = [1, 1, 1]} : vector<1x8x96xf32> to vector<1x8x8xf32>
    %106 = arith.truncf %105 : vector<1x8x8xf32> to vector<1x8x8xbf16>
    %107 = vector.extract_strided_slice %29 {offsets = [0, 0, 88], sizes = [1, 8, 8], strides = [1, 1, 1]} : vector<1x8x96xf32> to vector<1x8x8xf32>
    %108 = arith.truncf %107 : vector<1x8x8xf32> to vector<1x8x8xbf16>
    "tpu.trace_start"() <{level = 10 : i32, message = "bqd,bkd->bqk"}> : () -> ()
    %cst_30 = arith.constant dense<0.000000e+00> : vector<1x8x8xf32>
    %109 = tpu.matmul %104, %106, %cst_30 {dimension_numbers = #tpu.dot_dimension_numbers<[2], [2], [1], [1], [0, 0, 0, 1, 1, 1], [0], [0]>} : vector<1x8x8xbf16>, vector<1x8x8xbf16>, vector<1x8x8xf32> -> vector<1x8x8xf32>
    "tpu.trace_stop"() : () -> ()
    %cst_31 = arith.constant 0.353553385 : f32
    %110 = vector.broadcast %cst_31 : f32 to vector<1x8x8xf32>
    %111 = arith.mulf %109, %110 : vector<1x8x8xf32>
    %112 = arith.addf %111, %36 : vector<1x8x8xf32>
    %cst_32 = arith.constant dense<0xFF800000> : vector<1x8xf32>
    %113 = vector.multi_reduction <maximumf>, %112, %cst_32 [2] : vector<1x8x8xf32> to vector<1x8xf32>
    %114 = vector.shape_cast %113 : vector<1x8xf32> to vector<1x8x1xf32>
    %115 = vector.broadcast %114 : vector<1x8x1xf32> to vector<1x8x8xf32>
    %116 = arith.subf %112, %115 : vector<1x8x8xf32>
    %117 = math.exp %116 : vector<1x8x8xf32>
    %cst_33 = arith.constant dense<0.000000e+00> : vector<1x8xf32>
    %118 = vector.multi_reduction <add>, %117, %cst_33 [2] : vector<1x8x8xf32> to vector<1x8xf32>
    %119 = vector.shape_cast %118 : vector<1x8xf32> to vector<1x8x1xf32>
    %120 = vector.broadcast %119 : vector<1x8x1xf32> to vector<1x8x8xf32>
    %121 = arith.divf %117, %120 : vector<1x8x8xf32>
    %122 = arith.truncf %121 : vector<1x8x8xf32> to vector<1x8x8xbf16>
    "tpu.trace_start"() <{level = 10 : i32, message = "bqk,bkd->bqd"}> : () -> ()
    %cst_34 = arith.constant dense<0.000000e+00> : vector<1x8x8xf32>
    %123 = tpu.matmul %122, %108, %cst_34 {dimension_numbers = #tpu.dot_dimension_numbers<[2], [1], [1], [2], [0, 0, 0, 1, 1, 2], [0], [0]>} : vector<1x8x8xbf16>, vector<1x8x8xbf16>, vector<1x8x8xf32> -> vector<1x8x8xf32>
    "tpu.trace_stop"() : () -> ()
    %124 = vector.shape_cast %123 : vector<1x8x8xf32> to vector<8x8xf32>
    %125 = tpu.concatenate %58, %80, %102, %124 in 1 : vector<8x8xf32>, vector<8x8xf32>, vector<8x8xf32>, vector<8x8xf32> -> vector<8x32xf32>
    %126 = arith.truncf %125 : vector<8x32xf32> to vector<8x32xbf16>
    %c0_35 = arith.constant 0 : index
    %c0_36 = arith.constant 0 : index
    %c0_37 = arith.constant 0 : index
    %127 = vector.load %arg11[%c0_35, %c0_36, %c0_37] : memref<1x32x32xbf16, #tpu.memory_space<vmem>>, vector<1x32x32xbf16>
    %128 = vector.shape_cast %127 : vector<1x32x32xbf16> to vector<32x32xbf16>
    %cst_38 = arith.constant dense<0.000000e+00> : vector<8x32xf32>
    %129 = tpu.matmul %126, %128, %cst_38 {dimension_numbers = #tpu.dot_dimension_numbers<[1], [0], [0], [1], [0, 0, 1, 1], [], []>} : vector<8x32xbf16>, vector<32x32xbf16>, vector<8x32xf32> -> vector<8x32xf32>
    %130 = arith.addf %3, %129 : vector<8x32xf32>
    %131 = vector.extract_strided_slice %5 {offsets = [1, 0], sizes = [1, 32], strides = [1, 1]} : vector<2x32xf32> to vector<1x32xf32>
    %cst_39 = arith.constant dense<0.000000e+00> : vector<8xf32>
    %132 = vector.multi_reduction <add>, %130, %cst_39 [1] : vector<8x32xf32> to vector<8xf32>
    %133 = vector.shape_cast %132 : vector<8xf32> to vector<8x1xf32>
    %cst_40 = arith.constant 3.200000e+01 : f32
    %134 = vector.broadcast %cst_40 : f32 to vector<8x1xf32>
    %135 = arith.divf %133, %134 : vector<8x1xf32>
    %136 = vector.broadcast %135 : vector<8x1xf32> to vector<8x32xf32>
    %137 = arith.subf %130, %136 : vector<8x32xf32>
    %138 = arith.mulf %137, %137 : vector<8x32xf32>
    %cst_41 = arith.constant dense<0.000000e+00> : vector<8xf32>
    %139 = vector.multi_reduction <add>, %138, %cst_41 [1] : vector<8x32xf32> to vector<8xf32>
    %140 = vector.shape_cast %139 : vector<8xf32> to vector<8x1xf32>
    %cst_42 = arith.constant 3.200000e+01 : f32
    %141 = vector.broadcast %cst_42 : f32 to vector<8x1xf32>
    %142 = arith.divf %140, %141 : vector<8x1xf32>
    %cst_43 = arith.constant 9.99999974E-6 : f32
    %143 = vector.broadcast %cst_43 : f32 to vector<8x1xf32>
    %144 = arith.addf %142, %143 : vector<8x1xf32>
    %145 = math.rsqrt %144 : vector<8x1xf32>
    %146 = vector.broadcast %145 : vector<8x1xf32> to vector<8x32xf32>
    %147 = arith.mulf %137, %146 : vector<8x32xf32>
    %148 = vector.broadcast %131 : vector<1x32xf32> to vector<8x32xf32>
    %149 = arith.mulf %147, %148 : vector<8x32xf32>
    %150 = arith.truncf %149 : vector<8x32xf32> to vector<8x32xbf16>
    %c0_44 = arith.constant 0 : index
    %c0_45 = arith.constant 0 : index
    %c0_46 = arith.constant 0 : index
    %151 = vector.load %arg12[%c0_44, %c0_45, %c0_46] : memref<1x32x128xbf16, #tpu.memory_space<vmem>>, vector<1x32x128xbf16>
    %152 = vector.shape_cast %151 : vector<1x32x128xbf16> to vector<32x128xbf16>
    %cst_47 = arith.constant dense<0.000000e+00> : vector<8x128xf32>
    %153 = tpu.matmul %150, %152, %cst_47 {dimension_numbers = #tpu.dot_dimension_numbers<[1], [0], [0], [1], [0, 0, 1, 1], [], []>} : vector<8x32xbf16>, vector<32x128xbf16>, vector<8x128xf32> -> vector<8x128xf32>
    %154 = arith.mulf %153, %153 : vector<8x128xf32>
    %155 = arith.mulf %153, %154 : vector<8x128xf32>
    %cst_48 = arith.constant 4.471500e-02 : f32
    %156 = vector.broadcast %cst_48 : f32 to vector<8x128xf32>
    %157 = arith.mulf %156, %155 : vector<8x128xf32>
    %158 = arith.addf %153, %157 : vector<8x128xf32>
    %cst_49 = arith.constant 0.797884583 : f32
    %159 = vector.broadcast %cst_49 : f32 to vector<8x128xf32>
    %160 = arith.mulf %159, %158 : vector<8x128xf32>
    %161 = math.tanh %160 : vector<8x128xf32>
    %cst_50 = arith.constant 1.000000e+00 : f32
    %162 = vector.broadcast %cst_50 : f32 to vector<8x128xf32>
    %163 = arith.addf %162, %161 : vector<8x128xf32>
    %cst_51 = arith.constant 5.000000e-01 : f32
    %164 = vector.broadcast %cst_51 : f32 to vector<8x128xf32>
    %165 = arith.mulf %164, %163 : vector<8x128xf32>
    %166 = arith.mulf %153, %165 : vector<8x128xf32>
    %167 = arith.truncf %166 : vector<8x128xf32> to vector<8x128xbf16>
    %c0_52 = arith.constant 0 : index
    %c0_53 = arith.constant 0 : index
    %c0_54 = arith.constant 0 : index
    %168 = vector.load %arg13[%c0_52, %c0_53, %c0_54] : memref<1x128x32xbf16, #tpu.memory_space<vmem>>, vector<1x128x32xbf16>
    %169 = vector.shape_cast %168 : vector<1x128x32xbf16> to vector<128x32xbf16>
    %cst_55 = arith.constant dense<0.000000e+00> : vector<8x32xf32>
    %170 = tpu.matmul %167, %169, %cst_55 {dimension_numbers = #tpu.dot_dimension_numbers<[1], [0], [0], [1], [0, 0, 1, 1], [], []>} : vector<8x128xbf16>, vector<128x32xbf16>, vector<8x32xf32> -> vector<8x32xf32>
    %171 = arith.addf %130, %170 : vector<8x32xf32>
    %c0_56 = arith.constant 0 : index
    %c0_57 = arith.constant 0 : index
    %172 = vector.load %arg19[%c0_56, %c0_57] : memref<8x32xf32, #tpu.memory_space<vmem>>, vector<8x32xf32>
    tpu.vector_store %arg19[%c0_56, %c0_57], %171 {strides = array<i32>} : memref<8x32xf32, #tpu.memory_space<vmem>>, vector<8x32xf32>,
    %c1_i32 = arith.constant 1 : i32
    %173 = arith.cmpi eq, %arg1, %c1_i32 : i32
    %174 = arith.extui %173 : i1 to i32
    %c0_i32_58 = arith.constant 0 : i32
    %175 = arith.cmpi ne, %174, %c0_i32_58 : i32
    scf.if %175 {
      %c0_59 = arith.constant 0 : index
      %c0_60 = arith.constant 0 : index
      %176 = vector.load %arg14[%c0_59, %c0_60] : memref<1x32xf32, #tpu.memory_space<vmem>>, vector<1x32xf32>
      %cst_61 = arith.constant dense<0.000000e+00> : vector<8xf32>
      %177 = vector.multi_reduction <add>, %171, %cst_61 [1] : vector<8x32xf32> to vector<8xf32>
      %178 = vector.shape_cast %177 : vector<8xf32> to vector<8x1xf32>
      %cst_62 = arith.constant 3.200000e+01 : f32
      %179 = vector.broadcast %cst_62 : f32 to vector<8x1xf32>
      %180 = arith.divf %178, %179 : vector<8x1xf32>
      %181 = vector.broadcast %180 : vector<8x1xf32> to vector<8x32xf32>
      %182 = arith.subf %171, %181 : vector<8x32xf32>
      %183 = arith.mulf %182, %182 : vector<8x32xf32>
      %cst_63 = arith.constant dense<0.000000e+00> : vector<8xf32>
      %184 = vector.multi_reduction <add>, %183, %cst_63 [1] : vector<8x32xf32> to vector<8xf32>
      %185 = vector.shape_cast %184 : vector<8xf32> to vector<8x1xf32>
      %cst_64 = arith.constant 3.200000e+01 : f32
      %186 = vector.broadcast %cst_64 : f32 to vector<8x1xf32>
      %187 = arith.divf %185, %186 : vector<8x1xf32>
      %cst_65 = arith.constant 9.99999974E-6 : f32
      %188 = vector.broadcast %cst_65 : f32 to vector<8x1xf32>
      %189 = arith.addf %187, %188 : vector<8x1xf32>
      %190 = math.rsqrt %189 : vector<8x1xf32>
      %191 = vector.broadcast %190 : vector<8x1xf32> to vector<8x32xf32>
      %192 = arith.mulf %182, %191 : vector<8x32xf32>
      %193 = vector.broadcast %176 : vector<1x32xf32> to vector<8x32xf32>
      %194 = arith.mulf %192, %193 : vector<8x32xf32>
      %c0_66 = arith.constant 0 : index
      %c0_67 = arith.constant 0 : index
      %c0_68 = arith.constant 0 : index
      %195 = vector.load %arg4[%c0_66, %c0_67, %c0_68] : memref<1x1x8xbf16, #tpu.memory_space<vmem>>, vector<1x1x8xbf16>
      %196 = vector.shape_cast %195 : vector<1x1x8xbf16> to vector<1x8xbf16>
      %197 = arith.truncf %194 : vector<8x32xf32> to vector<8x32xbf16>
      %cst_69 = arith.constant dense<0.000000e+00> : vector<1x32xf32>
      %198 = tpu.matmul %196, %197, %cst_69 {dimension_numbers = #tpu.dot_dimension_numbers<[1], [0], [0], [1], [0, 0, 1, 1], [], []>} : vector<1x8xbf16>, vector<8x32xbf16>, vector<1x32xf32> -> vector<1x32xf32>
      %c0_70 = arith.constant 0 : index
      %c0_71 = arith.constant 0 : index
      %199 = vector.load %arg15[%c0_70, %c0_71] : memref<32x136xbf16, #tpu.memory_space<vmem>>, vector<32x136xbf16>
      %200 = vector.extract_strided_slice %199 {offsets = [0, 0], sizes = [32, 32], strides = [1, 1]} : vector<32x136xbf16> to vector<32x32xbf16>
      %201 = vector.extract_strided_slice %199 {offsets = [0, 32], sizes = [32, 32], strides = [1, 1]} : vector<32x136xbf16> to vector<32x32xbf16>
      %202 = vector.extract_strided_slice %199 {offsets = [0, 64], sizes = [32, 72], strides = [1, 1]} : vector<32x136xbf16> to vector<32x72xbf16>
      %c0_72 = arith.constant 0 : index
      %c0_73 = arith.constant 0 : index
      %203 = vector.load %arg16[%c0_72, %c0_73] : memref<16x48xbf16, #tpu.memory_space<vmem>>, vector<16x48xbf16>
      %204 = vector.extract_strided_slice %203 {offsets = [0, 0], sizes = [16, 16], strides = [1, 1]} : vector<16x48xbf16> to vector<16x16xbf16>
      %205 = vector.extract_strided_slice %203 {offsets = [0, 16], sizes = [16, 32], strides = [1, 1]} : vector<16x48xbf16> to vector<16x32xbf16>
      %c0_74 = arith.constant 0 : index
      %c0_75 = arith.constant 0 : index
      %206 = vector.load %arg17[%c0_74, %c0_75] : memref<1x184xf32, #tpu.memory_space<vmem>>, vector<1x184xf32>
      %207 = vector.extract_strided_slice %206 {offsets = [0, 0], sizes = [1, 32], strides = [1, 1]} : vector<1x184xf32> to vector<1x32xf32>
      %208 = vector.extract_strided_slice %206 {offsets = [0, 32], sizes = [1, 16], strides = [1, 1]} : vector<1x184xf32> to vector<1x16xf32>
      %209 = vector.extract_strided_slice %206 {offsets = [0, 48], sizes = [1, 16], strides = [1, 1]} : vector<1x184xf32> to vector<1x16xf32>
      %210 = vector.extract_strided_slice %206 {offsets = [0, 64], sizes = [1, 16], strides = [1, 1]} : vector<1x184xf32> to vector<1x16xf32>
      %211 = vector.extract_strided_slice %206 {offsets = [0, 80], sizes = [1, 32], strides = [1, 1]} : vector<1x184xf32> to vector<1x32xf32>
      %212 = vector.extract_strided_slice %206 {offsets = [0, 112], sizes = [1, 72], strides = [1, 1]} : vector<1x184xf32> to vector<1x72xf32>
      %213 = arith.truncf %198 : vector<1x32xf32> to vector<1x32xbf16>
      %cst_76 = arith.constant dense<0.000000e+00> : vector<1x32xf32>
      %214 = tpu.matmul %213, %200, %cst_76 {dimension_numbers = #tpu.dot_dimension_numbers<[1], [0], [0], [1], [0, 0, 1, 1], [], []>} : vector<1x32xbf16>, vector<32x32xbf16>, vector<1x32xf32> -> vector<1x32xf32>
      %215 = arith.addf %214, %207 : vector<1x32xf32>
      %216 = arith.truncf %215 : vector<1x32xf32> to vector<1x32xbf16>
      %cst_77 = arith.constant dense<0.000000e+00> : vector<1x32xf32>
      %217 = tpu.matmul %216, %201, %cst_77 {dimension_numbers = #tpu.dot_dimension_numbers<[1], [0], [0], [1], [0, 0, 1, 1], [], []>} : vector<1x32xbf16>, vector<32x32xbf16>, vector<1x32xf32> -> vector<1x32xf32>
      %218 = vector.shape_cast %217 : vector<1x32xf32> to vector<1x32xf32>
      %219 = vector.broadcast %218 : vector<1x32xf32> to vector<3x32xf32>
      %c0_78 = arith.constant 0 : index
      %c0_79 = arith.constant 0 : index
      %c0_80 = arith.constant 0 : index
      %220 = vector.load %arg6[%c0_78, %c0_79, %c0_80] : memref<1x3x1xf32, #tpu.memory_space<vmem>>, vector<1x3x1xf32>
      %221 = vector.shape_cast %220 : vector<1x3x1xf32> to vector<3x1xf32>
      %cst_81 = arith.constant 2.77777785E-4 : f32
      %222 = vector.broadcast %cst_81 : f32 to vector<3x1xf32>
      %223 = arith.mulf %221, %222 : vector<3x1xf32>
      %cst_82 = arith.constant 0.000000e+00 : f32
      %cst_83 = arith.constant 2.000000e+00 : f32
      %224 = vector.broadcast %cst_82 : f32 to vector<3x1xf32>
      %225 = arith.maximumf %224, %223 : vector<3x1xf32>
      %226 = vector.broadcast %cst_83 : f32 to vector<3x1xf32>
      %227 = arith.minimumf %226, %225 : vector<3x1xf32>
      %228 = vector.broadcast %227 : vector<3x1xf32> to vector<3x16xf32>
      %229 = vector.broadcast %208 : vector<1x16xf32> to vector<3x16xf32>
      %230 = arith.mulf %228, %229 : vector<3x16xf32>
      %231 = vector.broadcast %209 : vector<1x16xf32> to vector<3x16xf32>
      %232 = arith.addf %230, %231 : vector<3x16xf32>
      %cst_84 = arith.constant 0.000000e+00 : f32
      %233 = vector.broadcast %cst_84 : f32 to vector<3x16xf32>
      %234 = arith.maximumf %232, %233 : vector<3x16xf32>
      %235 = arith.truncf %234 : vector<3x16xf32> to vector<3x16xbf16>
      %cst_85 = arith.constant dense<0.000000e+00> : vector<3x16xf32>
      %236 = tpu.matmul %235, %204, %cst_85 {dimension_numbers = #tpu.dot_dimension_numbers<[1], [0], [0], [1], [0, 0, 1, 1], [], []>} : vector<3x16xbf16>, vector<16x16xbf16>, vector<3x16xf32> -> vector<3x16xf32>
      %237 = vector.broadcast %210 : vector<1x16xf32> to vector<3x16xf32>
      %238 = arith.addf %236, %237 : vector<3x16xf32>
      %239 = arith.truncf %238 : vector<3x16xf32> to vector<3x16xbf16>
      %cst_86 = arith.constant dense<0.000000e+00> : vector<3x32xf32>
      %240 = tpu.matmul %239, %205, %cst_86 {dimension_numbers = #tpu.dot_dimension_numbers<[1], [0], [0], [1], [0, 0, 1, 1], [], []>} : vector<3x16xbf16>, vector<16x32xbf16>, vector<3x32xf32> -> vector<3x32xf32>
      %241 = arith.addf %219, %240 : vector<3x32xf32>
      %242 = vector.broadcast %211 : vector<1x32xf32> to vector<3x32xf32>
      %243 = arith.addf %241, %242 : vector<3x32xf32>
      %244 = arith.truncf %243 : vector<3x32xf32> to vector<3x32xbf16>
      %cst_87 = arith.constant dense<0.000000e+00> : vector<3x72xf32>
      %245 = tpu.matmul %244, %202, %cst_87 {dimension_numbers = #tpu.dot_dimension_numbers<[1], [0], [0], [1], [0, 0, 1, 1], [], []>} : vector<3x32xbf16>, vector<32x72xbf16>, vector<3x72xf32> -> vector<3x72xf32>
      %246 = vector.broadcast %212 : vector<1x72xf32> to vector<3x72xf32>
      %247 = arith.addf %245, %246 : vector<3x72xf32>
      %c0_88 = arith.constant 0 : index
      %c0_89 = arith.constant 0 : index
      %c0_90 = arith.constant 0 : index
      %248 = vector.load %arg7[%c0_88, %c0_89, %c0_90] : memref<1x3x2xf32, #tpu.memory_space<vmem>>, vector<1x3x2xf32>
      %249 = vector.shape_cast %248 : vector<1x3x2xf32> to vector<3x2xf32>
      %250 = tpu.iota {dimensions = array<i32: 1>} : vector<1x9xi32>
      %251 = arith.sitofp %250 : vector<1x9xi32> to vector<1x9xf32>
      %252 = vector.extract_strided_slice %249 {offsets = [0, 0], sizes = [3, 1], strides = [1, 1]} : vector<3x2xf32> to vector<3x1xf32>
      %253 = vector.extract_strided_slice %249 {offsets = [0, 1], sizes = [3, 1], strides = [1, 1]} : vector<3x2xf32> to vector<3x1xf32>
      %cst_91 = arith.constant 3.14159274 : f32
      %254 = vector.broadcast %cst_91 : f32 to vector<3x1xf32>
      %255 = arith.mulf %254, %252 : vector<3x1xf32>
      %256 = vector.broadcast %255 : vector<3x1xf32> to vector<3x9xf32>
      %257 = vector.broadcast %251 : vector<1x9xf32> to vector<3x9xf32>
      %258 = arith.mulf %256, %257 : vector<3x9xf32>
      %259 = math.cos %258 : vector<3x9xf32>
      %cst_92 = arith.constant 3.14159274 : f32
      %260 = vector.broadcast %cst_92 : f32 to vector<3x1xf32>
      %261 = arith.mulf %260, %252 : vector<3x1xf32>
      %262 = vector.broadcast %261 : vector<3x1xf32> to vector<3x9xf32>
      %263 = vector.broadcast %251 : vector<1x9xf32> to vector<3x9xf32>
      %264 = arith.mulf %262, %263 : vector<3x9xf32>
      %265 = math.sin %264 : vector<3x9xf32>
      %cst_93 = arith.constant 3.14159274 : f32
      %266 = vector.broadcast %cst_93 : f32 to vector<3x1xf32>
      %267 = arith.mulf %266, %253 : vector<3x1xf32>
      %268 = vector.broadcast %267 : vector<3x1xf32> to vector<3x9xf32>
      %269 = vector.broadcast %251 : vector<1x9xf32> to vector<3x9xf32>
      %270 = arith.mulf %268, %269 : vector<3x9xf32>
      %271 = math.cos %270 : vector<3x9xf32>
      %cst_94 = arith.constant 3.14159274 : f32
      %272 = vector.broadcast %cst_94 : f32 to vector<3x1xf32>
      %273 = arith.mulf %272, %253 : vector<3x1xf32>
      %274 = vector.broadcast %273 : vector<3x1xf32> to vector<3x9xf32>
      %275 = vector.broadcast %251 : vector<1x9xf32> to vector<3x9xf32>
      %276 = arith.mulf %274, %275 : vector<3x9xf32>
      %277 = math.sin %276 : vector<3x9xf32>
      %278 = vector.extract_strided_slice %247 {offsets = [0, 0], sizes = [3, 9], strides = [1, 1]} : vector<3x72xf32> to vector<3x9xf32>
      %279 = vector.extract_strided_slice %247 {offsets = [0, 9], sizes = [3, 9], strides = [1, 1]} : vector<3x72xf32> to vector<3x9xf32>
      %280 = vector.extract_strided_slice %247 {offsets = [0, 18], sizes = [3, 9], strides = [1, 1]} : vector<3x72xf32> to vector<3x9xf32>
      %281 = vector.extract_strided_slice %247 {offsets = [0, 27], sizes = [3, 9], strides = [1, 1]} : vector<3x72xf32> to vector<3x9xf32>
      %282 = vector.extract_strided_slice %247 {offsets = [0, 36], sizes = [3, 9], strides = [1, 1]} : vector<3x72xf32> to vector<3x9xf32>
      %283 = vector.extract_strided_slice %247 {offsets = [0, 45], sizes = [3, 9], strides = [1, 1]} : vector<3x72xf32> to vector<3x9xf32>
      %284 = vector.extract_strided_slice %247 {offsets = [0, 54], sizes = [3, 9], strides = [1, 1]} : vector<3x72xf32> to vector<3x9xf32>
      %285 = vector.extract_strided_slice %247 {offsets = [0, 63], sizes = [3, 9], strides = [1, 1]} : vector<3x72xf32> to vector<3x9xf32>
      %cst_95 = arith.constant 0.000000e+00 : f32
      %286 = vector.broadcast %cst_95 : f32 to vector<3x1xf32>
      %cst_96 = arith.constant 0.000000e+00 : f32
      %287 = vector.broadcast %cst_96 : f32 to vector<3x1xf32>
      %288 = arith.mulf %278, %259 : vector<3x9xf32>
      %289 = arith.mulf %280, %265 : vector<3x9xf32>
      %290 = arith.subf %288, %289 : vector<3x9xf32>
      %cst_97 = arith.constant dense<0.000000e+00> : vector<3xf32>
      %291 = vector.multi_reduction <add>, %290, %cst_97 [1] : vector<3x9xf32> to vector<3xf32>
      %292 = vector.shape_cast %291 : vector<3xf32> to vector<3x1xf32>
      %293 = arith.mulf %278, %265 : vector<3x9xf32>
      %294 = arith.mulf %280, %259 : vector<3x9xf32>
      %295 = arith.addf %293, %294 : vector<3x9xf32>
      %cst_98 = arith.constant dense<0.000000e+00> : vector<3xf32>
      %296 = vector.multi_reduction <add>, %295, %cst_98 [1] : vector<3x9xf32> to vector<3xf32>
      %297 = vector.shape_cast %296 : vector<3xf32> to vector<3x1xf32>
      %298 = arith.mulf %282, %271 : vector<3x9xf32>
      %299 = arith.mulf %284, %277 : vector<3x9xf32>
      %300 = arith.subf %298, %299 : vector<3x9xf32>
      %cst_99 = arith.constant dense<0.000000e+00> : vector<3xf32>
      %301 = vector.multi_reduction <add>, %300, %cst_99 [1] : vector<3x9xf32> to vector<3xf32>
      %302 = vector.shape_cast %301 : vector<3xf32> to vector<3x1xf32>
      %303 = arith.mulf %282, %277 : vector<3x9xf32>
      %304 = arith.mulf %284, %271 : vector<3x9xf32>
      %305 = arith.addf %303, %304 : vector<3x9xf32>
      %cst_100 = arith.constant dense<0.000000e+00> : vector<3xf32>
      %306 = vector.multi_reduction <add>, %305, %cst_100 [1] : vector<3x9xf32> to vector<3xf32>
      %307 = vector.shape_cast %306 : vector<3xf32> to vector<3x1xf32>
      %308 = arith.mulf %292, %302 : vector<3x1xf32>
      %309 = arith.addf %286, %308 : vector<3x1xf32>
      %310 = arith.mulf %297, %307 : vector<3x1xf32>
      %311 = arith.subf %309, %310 : vector<3x1xf32>
      %312 = arith.mulf %292, %307 : vector<3x1xf32>
      %313 = arith.addf %287, %312 : vector<3x1xf32>
      %314 = arith.mulf %297, %302 : vector<3x1xf32>
      %315 = arith.addf %313, %314 : vector<3x1xf32>
      %316 = arith.mulf %279, %259 : vector<3x9xf32>
      %317 = arith.mulf %281, %265 : vector<3x9xf32>
      %318 = arith.subf %316, %317 : vector<3x9xf32>
      %cst_101 = arith.constant dense<0.000000e+00> : vector<3xf32>
      %319 = vector.multi_reduction <add>, %318, %cst_101 [1] : vector<3x9xf32> to vector<3xf32>
      %320 = vector.shape_cast %319 : vector<3xf32> to vector<3x1xf32>
      %321 = arith.mulf %279, %265 : vector<3x9xf32>
      %322 = arith.mulf %281, %259 : vector<3x9xf32>
      %323 = arith.addf %321, %322 : vector<3x9xf32>
      %cst_102 = arith.constant dense<0.000000e+00> : vector<3xf32>
      %324 = vector.multi_reduction <add>, %323, %cst_102 [1] : vector<3x9xf32> to vector<3xf32>
      %325 = vector.shape_cast %324 : vector<3xf32> to vector<3x1xf32>
      %326 = arith.mulf %283, %271 : vector<3x9xf32>
      %327 = arith.mulf %285, %277 : vector<3x9xf32>
      %328 = arith.subf %326, %327 : vector<3x9xf32>
      %cst_103 = arith.constant dense<0.000000e+00> : vector<3xf32>
      %329 = vector.multi_reduction <add>, %328, %cst_103 [1] : vector<3x9xf32> to vector<3xf32>
      %330 = vector.shape_cast %329 : vector<3xf32> to vector<3x1xf32>
      %331 = arith.mulf %283, %277 : vector<3x9xf32>
      %332 = arith.mulf %285, %271 : vector<3x9xf32>
      %333 = arith.addf %331, %332 : vector<3x9xf32>
      %cst_104 = arith.constant dense<0.000000e+00> : vector<3xf32>
      %334 = vector.multi_reduction <add>, %333, %cst_104 [1] : vector<3x9xf32> to vector<3xf32>
      %335 = vector.shape_cast %334 : vector<3xf32> to vector<3x1xf32>
      %336 = arith.mulf %320, %330 : vector<3x1xf32>
      %337 = arith.addf %311, %336 : vector<3x1xf32>
      %338 = arith.mulf %325, %335 : vector<3x1xf32>
      %339 = arith.subf %337, %338 : vector<3x1xf32>
      %340 = arith.mulf %320, %335 : vector<3x1xf32>
      %341 = arith.addf %315, %340 : vector<3x1xf32>
      %342 = arith.mulf %325, %330 : vector<3x1xf32>
      %343 = arith.addf %341, %342 : vector<3x1xf32>
      %cst_105 = arith.constant 0.000000e+00 : f32
      %344 = vector.broadcast %cst_105 : f32 to vector<3x1xf32>
      %345 = arith.mulf %278, %278 : vector<3x9xf32>
      %346 = arith.mulf %280, %280 : vector<3x9xf32>
      %347 = arith.addf %345, %346 : vector<3x9xf32>
      %cst_106 = arith.constant dense<0.000000e+00> : vector<3xf32>
      %348 = vector.multi_reduction <add>, %347, %cst_106 [1] : vector<3x9xf32> to vector<3xf32>
      %349 = vector.shape_cast %348 : vector<3xf32> to vector<3x1xf32>
      %350 = arith.mulf %280, %278 : vector<3x9xf32>
      %351 = arith.mulf %278, %280 : vector<3x9xf32>
      %352 = arith.subf %350, %351 : vector<3x9xf32>
      %cst_107 = arith.constant dense<0.000000e+00> : vector<3xf32>
      %353 = vector.multi_reduction <add>, %352, %cst_107 [1] : vector<3x9xf32> to vector<3xf32>
      %354 = vector.shape_cast %353 : vector<3xf32> to vector<3x1xf32>
      %355 = arith.mulf %282, %282 : vector<3x9xf32>
      %356 = arith.mulf %284, %284 : vector<3x9xf32>
      %357 = arith.addf %355, %356 : vector<3x9xf32>
      %cst_108 = arith.constant dense<0.000000e+00> : vector<3xf32>
      %358 = vector.multi_reduction <add>, %357, %cst_108 [1] : vector<3x9xf32> to vector<3xf32>
      %359 = vector.shape_cast %358 : vector<3xf32> to vector<3x1xf32>
      %360 = arith.mulf %284, %282 : vector<3x9xf32>
      %361 = arith.mulf %282, %284 : vector<3x9xf32>
      %362 = arith.subf %360, %361 : vector<3x9xf32>
      %cst_109 = arith.constant dense<0.000000e+00> : vector<3xf32>
      %363 = vector.multi_reduction <add>, %362, %cst_109 [1] : vector<3x9xf32> to vector<3xf32>
      %364 = vector.shape_cast %363 : vector<3xf32> to vector<3x1xf32>
      %365 = arith.mulf %349, %359 : vector<3x1xf32>
      %366 = arith.addf %344, %365 : vector<3x1xf32>
      %367 = arith.mulf %354, %364 : vector<3x1xf32>
      %368 = arith.subf %366, %367 : vector<3x1xf32>
      %369 = arith.mulf %278, %279 : vector<3x9xf32>
      %370 = arith.mulf %280, %281 : vector<3x9xf32>
      %371 = arith.addf %369, %370 : vector<3x9xf32>
      %cst_110 = arith.constant dense<0.000000e+00> : vector<3xf32>
      %372 = vector.multi_reduction <add>, %371, %cst_110 [1] : vector<3x9xf32> to vector<3xf32>
      %373 = vector.shape_cast %372 : vector<3xf32> to vector<3x1xf32>
      %374 = arith.mulf %280, %279 : vector<3x9xf32>
      %375 = arith.mulf %278, %281 : vector<3x9xf32>
      %376 = arith.subf %374, %375 : vector<3x9xf32>
      %cst_111 = arith.constant dense<0.000000e+00> : vector<3xf32>
      %377 = vector.multi_reduction <add>, %376, %cst_111 [1] : vector<3x9xf32> to vector<3xf32>
      %378 = vector.shape_cast %377 : vector<3xf32> to vector<3x1xf32>
      %379 = arith.mulf %282, %283 : vector<3x9xf32>
      %380 = arith.mulf %284, %285 : vector<3x9xf32>
      %381 = arith.addf %379, %380 : vector<3x9xf32>
      %cst_112 = arith.constant dense<0.000000e+00> : vector<3xf32>
      %382 = vector.multi_reduction <add>, %381, %cst_112 [1] : vector<3x9xf32> to vector<3xf32>
      %383 = vector.shape_cast %382 : vector<3xf32> to vector<3x1xf32>
      %384 = arith.mulf %284, %283 : vector<3x9xf32>
      %385 = arith.mulf %282, %285 : vector<3x9xf32>
      %386 = arith.subf %384, %385 : vector<3x9xf32>
      %cst_113 = arith.constant dense<0.000000e+00> : vector<3xf32>
      %387 = vector.multi_reduction <add>, %386, %cst_113 [1] : vector<3x9xf32> to vector<3xf32>
      %388 = vector.shape_cast %387 : vector<3xf32> to vector<3x1xf32>
      %389 = arith.mulf %373, %383 : vector<3x1xf32>
      %390 = arith.addf %368, %389 : vector<3x1xf32>
      %391 = arith.mulf %378, %388 : vector<3x1xf32>
      %392 = arith.subf %390, %391 : vector<3x1xf32>
      %393 = arith.mulf %279, %278 : vector<3x9xf32>
      %394 = arith.mulf %281, %280 : vector<3x9xf32>
      %395 = arith.addf %393, %394 : vector<3x9xf32>
      %cst_114 = arith.constant dense<0.000000e+00> : vector<3xf32>
      %396 = vector.multi_reduction <add>, %395, %cst_114 [1] : vector<3x9xf32> to vector<3xf32>
      %397 = vector.shape_cast %396 : vector<3xf32> to vector<3x1xf32>
      %398 = arith.mulf %281, %278 : vector<3x9xf32>
      %399 = arith.mulf %279, %280 : vector<3x9xf32>
      %400 = arith.subf %398, %399 : vector<3x9xf32>
      %cst_115 = arith.constant dense<0.000000e+00> : vector<3xf32>
      %401 = vector.multi_reduction <add>, %400, %cst_115 [1] : vector<3x9xf32> to vector<3xf32>
      %402 = vector.shape_cast %401 : vector<3xf32> to vector<3x1xf32>
      %403 = arith.mulf %283, %282 : vector<3x9xf32>
      %404 = arith.mulf %285, %284 : vector<3x9xf32>
      %405 = arith.addf %403, %404 : vector<3x9xf32>
      %cst_116 = arith.constant dense<0.000000e+00> : vector<3xf32>
      %406 = vector.multi_reduction <add>, %405, %cst_116 [1] : vector<3x9xf32> to vector<3xf32>
      %407 = vector.shape_cast %406 : vector<3xf32> to vector<3x1xf32>
      %408 = arith.mulf %285, %282 : vector<3x9xf32>
      %409 = arith.mulf %283, %284 : vector<3x9xf32>
      %410 = arith.subf %408, %409 : vector<3x9xf32>
      %cst_117 = arith.constant dense<0.000000e+00> : vector<3xf32>
      %411 = vector.multi_reduction <add>, %410, %cst_117 [1] : vector<3x9xf32> to vector<3xf32>
      %412 = vector.shape_cast %411 : vector<3xf32> to vector<3x1xf32>
      %413 = arith.mulf %397, %407 : vector<3x1xf32>
      %414 = arith.addf %392, %413 : vector<3x1xf32>
      %415 = arith.mulf %402, %412 : vector<3x1xf32>
      %416 = arith.subf %414, %415 : vector<3x1xf32>
      %417 = arith.mulf %279, %279 : vector<3x9xf32>
      %418 = arith.mulf %281, %281 : vector<3x9xf32>
      %419 = arith.addf %417, %418 : vector<3x9xf32>
      %cst_118 = arith.constant dense<0.000000e+00> : vector<3xf32>
      %420 = vector.multi_reduction <add>, %419, %cst_118 [1] : vector<3x9xf32> to vector<3xf32>
      %421 = vector.shape_cast %420 : vector<3xf32> to vector<3x1xf32>
      %422 = arith.mulf %281, %279 : vector<3x9xf32>
      %423 = arith.mulf %279, %281 : vector<3x9xf32>
      %424 = arith.subf %422, %423 : vector<3x9xf32>
      %cst_119 = arith.constant dense<0.000000e+00> : vector<3xf32>
      %425 = vector.multi_reduction <add>, %424, %cst_119 [1] : vector<3x9xf32> to vector<3xf32>
      %426 = vector.shape_cast %425 : vector<3xf32> to vector<3x1xf32>
      %427 = arith.mulf %283, %283 : vector<3x9xf32>
      %428 = arith.mulf %285, %285 : vector<3x9xf32>
      %429 = arith.addf %427, %428 : vector<3x9xf32>
      %cst_120 = arith.constant dense<0.000000e+00> : vector<3xf32>
      %430 = vector.multi_reduction <add>, %429, %cst_120 [1] : vector<3x9xf32> to vector<3xf32>
      %431 = vector.shape_cast %430 : vector<3xf32> to vector<3x1xf32>
      %432 = arith.mulf %285, %283 : vector<3x9xf32>
      %433 = arith.mulf %283, %285 : vector<3x9xf32>
      %434 = arith.subf %432, %433 : vector<3x9xf32>
      %cst_121 = arith.constant dense<0.000000e+00> : vector<3xf32>
      %435 = vector.multi_reduction <add>, %434, %cst_121 [1] : vector<3x9xf32> to vector<3xf32>
      %436 = vector.shape_cast %435 : vector<3xf32> to vector<3x1xf32>
      %437 = arith.mulf %421, %431 : vector<3x1xf32>
      %438 = arith.addf %416, %437 : vector<3x1xf32>
      %439 = arith.mulf %426, %436 : vector<3x1xf32>
      %440 = arith.subf %438, %439 : vector<3x1xf32>
      %cst_122 = arith.constant 9.99999996E-13 : f32
      %441 = vector.broadcast %cst_122 : f32 to vector<3x1xf32>
      %442 = arith.maximumf %440, %441 : vector<3x1xf32>
      %443 = arith.mulf %339, %339 : vector<3x1xf32>
      %444 = arith.mulf %343, %343 : vector<3x1xf32>
      %445 = arith.addf %443, %444 : vector<3x1xf32>
      %cst_123 = arith.constant 4.000000e+00 : f32
      %446 = vector.broadcast %cst_123 : f32 to vector<3x1xf32>
      %447 = arith.mulf %446, %442 : vector<3x1xf32>
      %448 = arith.divf %445, %447 : vector<3x1xf32>
      %cst_124 = arith.constant 9.99999991E-38 : f32
      %449 = vector.broadcast %cst_124 : f32 to vector<3x1xf32>
      %450 = arith.maximumf %448, %449 : vector<3x1xf32>
      %451 = math.log %450 : vector<3x1xf32>
      %c0_125 = arith.constant 0 : index
      %c0_126 = arith.constant 0 : index
      %c0_127 = arith.constant 0 : index
      %452 = vector.load %arg18[%c0_125, %c0_126, %c0_127] : memref<1x3x1xf32, #tpu.memory_space<vmem>>, vector<1x3x1xf32>
      %453 = vector.shape_cast %452 : vector<1x3x1xf32> to vector<3x1xf32>
      %454 = vector.shape_cast %451 : vector<3x1xf32> to vector<1x3x1xf32>
      tpu.vector_store %arg18[%c0_125, %c0_126, %c0_127], %454 {strides = array<i32>} : memref<1x3x1xf32, #tpu.memory_space<vmem>>, vector<1x3x1xf32>,
    } else {
    }
    return
  }
  func.func @transform_0(%arg0: i32, %arg1: i32) -> (i32, i32, i32) {
    %c0_i32 = arith.constant 0 : i32
    %c0_i32_0 = arith.constant 0 : i32
    %c0_i32_1 = arith.constant 0 : i32
    return %arg0, %c0_i32, %c0_i32_0 : i32, i32, i32
  }
  func.func @transform_1(%arg0: i32, %arg1: i32) -> (i32, i32) {
    %c0_i32 = arith.constant 0 : i32
    %c0_i32_0 = arith.constant 0 : i32
    %c0_i32_1 = arith.constant 0 : i32
    return %c0_i32, %c0_i32_0 : i32, i32
  }
  func.func @transform_2(%arg0: i32, %arg1: i32) -> (i32, i32, i32) {
    %c0_i32 = arith.constant 0 : i32
    %c0_i32_0 = arith.constant 0 : i32
    %c0_i32_1 = arith.constant 0 : i32
    return %arg0, %c0_i32, %c0_i32_0 : i32, i32, i32
  }
  func.func @transform_3(%arg0: i32, %arg1: i32) -> (i32, i32) {
    %c0_i32 = arith.constant 0 : i32
    %c0_i32_0 = arith.constant 0 : i32
    %c0_i32_1 = arith.constant 0 : i32
    return %c0_i32, %c0_i32_0 : i32, i32
  }
  func.func @transform_4(%arg0: i32, %arg1: i32) -> (i32, i32, i32) {
    %c0_i32 = arith.constant 0 : i32
    %c0_i32_0 = arith.constant 0 : i32
    %c0_i32_1 = arith.constant 0 : i32
    return %arg0, %c0_i32, %c0_i32_0 : i32, i32, i32
  }
  func.func @transform_5(%arg0: i32, %arg1: i32) -> (i32, i32, i32) {
    %c0_i32 = arith.constant 0 : i32
    %c0_i32_0 = arith.constant 0 : i32
    %c0_i32_1 = arith.constant 0 : i32
    return %arg0, %c0_i32, %c0_i32_0 : i32, i32, i32
  }
  func.func @transform_6(%arg0: i32, %arg1: i32) -> (i32, i32) {
    %c0_i32 = arith.constant 0 : i32
    %c0_i32_0 = arith.constant 0 : i32
    %c0_i32_1 = arith.constant 0 : i32
    return %c0_i32, %c0_i32_0 : i32, i32
  }
  func.func @transform_7(%arg0: i32, %arg1: i32) -> (i32, i32, i32) {
    %c0_i32 = arith.constant 0 : i32
    %c0_i32_0 = arith.constant 0 : i32
    %c0_i32_1 = arith.constant 0 : i32
    return %arg1, %c0_i32, %c0_i32_0 : i32, i32, i32
  }
  func.func @transform_8(%arg0: i32, %arg1: i32) -> (i32, i32, i32) {
    %c0_i32 = arith.constant 0 : i32
    %c0_i32_0 = arith.constant 0 : i32
    %c0_i32_1 = arith.constant 0 : i32
    return %arg1, %c0_i32, %c0_i32_0 : i32, i32, i32
  }
  func.func @transform_9(%arg0: i32, %arg1: i32) -> (i32, i32, i32) {
    %c0_i32 = arith.constant 0 : i32
    %c0_i32_0 = arith.constant 0 : i32
    %c0_i32_1 = arith.constant 0 : i32
    return %arg1, %c0_i32, %c0_i32_0 : i32, i32, i32
  }
  func.func @transform_10(%arg0: i32, %arg1: i32) -> (i32, i32, i32) {
    %c0_i32 = arith.constant 0 : i32
    %c0_i32_0 = arith.constant 0 : i32
    %c0_i32_1 = arith.constant 0 : i32
    return %arg1, %c0_i32, %c0_i32_0 : i32, i32, i32
  }
  func.func @transform_11(%arg0: i32, %arg1: i32) -> (i32, i32, i32) {
    %c0_i32 = arith.constant 0 : i32
    %c0_i32_0 = arith.constant 0 : i32
    %c0_i32_1 = arith.constant 0 : i32
    return %arg1, %c0_i32, %c0_i32_0 : i32, i32, i32
  }
  func.func @transform_12(%arg0: i32, %arg1: i32) -> (i32, i32) {
    %c0_i32 = arith.constant 0 : i32
    %c0_i32_0 = arith.constant 0 : i32
    %c0_i32_1 = arith.constant 0 : i32
    return %c0_i32, %c0_i32_0 : i32, i32
  }
  func.func @transform_13(%arg0: i32, %arg1: i32) -> (i32, i32) {
    %c0_i32 = arith.constant 0 : i32
    %c0_i32_0 = arith.constant 0 : i32
    %c0_i32_1 = arith.constant 0 : i32
    return %c0_i32, %c0_i32_0 : i32, i32
  }
  func.func @transform_14(%arg0: i32, %arg1: i32) -> (i32, i32) {
    %c0_i32 = arith.constant 0 : i32
    %c0_i32_0 = arith.constant 0 : i32
    %c0_i32_1 = arith.constant 0 : i32
    return %c0_i32, %c0_i32_0 : i32, i32
  }
  func.func @transform_15(%arg0: i32, %arg1: i32) -> (i32, i32) {
    %c0_i32 = arith.constant 0 : i32
    %c0_i32_0 = arith.constant 0 : i32
    %c0_i32_1 = arith.constant 0 : i32
    return %c0_i32, %c0_i32_0 : i32, i32
  }
  func.func @transform_16(%arg0: i32, %arg1: i32) -> (i32, i32, i32) {
    %c0_i32 = arith.constant 0 : i32
    %c0_i32_0 = arith.constant 0 : i32
    %c0_i32_1 = arith.constant 0 : i32
    return %arg0, %c0_i32, %c0_i32_0 : i32, i32, i32
  }
}

</mosaic_0001>

<bundles_post_ra>
// kernel: tpu_custom_call.1
= control target key start
LH: loop header
LB: loop body
LE: loop exit
PB: predicated region body
PF: predicated region fallthrough
CT: control target
= control target key end

     0   :  { %s3462_s20 = smov 0   ;;  %s3464_s21 = smov 0   ;;  %s4010_s0 = inlined_call_operand.vmem [shape: f32[2,8,5], index: 0, kind: input, shape index: {}]   ;;  %s4011_s1 = inlined_call_operand.vmem [shape: f32[8,32], index: 1, kind: input, shape index: {}]   ;;  %s4012_s2 = inlined_call_operand.vmem [shape: bf16[2,1,8], index: 2, kind: input, shape index: {}]   ;;  %s4013_s3 = inlined_call_operand.vmem [shape: bf16[3,1], index: 3, kind: input, shape index: {}]   ;;  %s4014_s4 = inlined_call_operand.vmem [shape: f32[2,3,1], index: 4, kind: input, shape index: {}]   ;;  %s4015_s5 = inlined_call_operand.vmem [shape: f32[2,3,2], index: 5, kind: input, shape index: {}]   ;;  %s4016_s6 = inlined_call_operand.vmem [shape: f32[5,32], index: 6, kind: input, shape index: {}]   ;;  %s4017_s7 = inlined_call_operand.vmem [shape: f32[2,2,32], index: 7, kind: input, shape index: {}]   ;;  %s4018_s8 = inlined_call_operand.vmem [shape: bf16[2,32,96], index: 8, kind: input, shape index: {}]   ;;  %s4019_s9 = inlined_call_operand.vmem [shape: bf16[2,32,32], index: 9, kind: input, shape index: {}]   ;;  %s4020_s10 = inlined_call_operand.vmem [shape: bf16[2,32,128], index: 10, kind: input, shape index: {}]   ;;  %s4021_s11 = inlined_call_operand.vmem [shape: bf16[2,128,32], index: 11, kind: input, shape index: {}]   ;;  %s4022_s12 = inlined_call_operand.vmem [shape: f32[1,32], index: 12, kind: input, shape index: {}]   ;;  %s4023_s13 = inlined_call_operand.vmem [shape: bf16[32,136], index: 13, kind: input, shape index: {}]   ;;  %s4024_s14 = inlined_call_operand.vmem [shape: bf16[16,48], index: 14, kind: input, shape index: {}]   ;;  %s4025_s15 = inlined_call_operand.vmem [shape: f32[1,184], index: 15, kind: input, shape index: {}]   ;;  %s4026_s16 = inlined_call_operand.vmem [shape: f32[2,3,1], index: 16, kind: output, shape index: {}]  }
   0x1   :  { %4032 = sst [smem:[#allocation9_spill]] %s4010_s0  ;;  %s3466_s22 = smov 0  }
   0x2   :  { %4033 = sst [smem:[#allocation10_spill]] %s4012_s2  ;;  %s3468_s3 = smov 0  }
   0x3   :  { %4034 = sst [smem:[#allocation11_spill]] %s4017_s7  ;;  %s3470_s23 = smov 0  }
   0x4   :  { %4035 = sst [smem:[#allocation12_spill]] %s4022_s12 }
   0x5   :  { %4036 = sst [smem:[#allocation13_spill]] %s4023_s13 }
   0x6   :  { %4037 = sst [smem:[#allocation14_spill]] %s4024_s14 }
   0x7 LB: > { %4038 = sst [smem:[#allocation3_spill]] %s3319_s22  ;;  %s35_s24 = sadd.s32 1, %s3319_s22  ;;  %s3327_s23 = sphi %s3470_s23, %s26_s23   ;;  %s3323_s3 = sphi %s3468_s3, %s4059_s3   ;;  %s3319_s22 = sphi %s3466_s22, %s4058_s22   ;;  %s3315_s21 = sphi %s3464_s21, %s4057_s21   ;;  %s3311_s20 = sphi %s3462_s20, %s4056_s20  }
   0x8   : > { %4039 = sst [smem:[#allocation4_spill]] %s3323_s3  ;;  %s38_s25 = sadd.s32 1, %s3323_s3 }
   0x9   : > { %4040 = sst [smem:[#allocation5_spill]] %s3327_s23  ;;  %p36_p0 = scmp.ge.s32.totalorder %s35_s24, 2 }
   0xa   : > { %p2867_p1 = scmp.ge.s32.totalorder %s3327_s23, 1  ;;  %p548_p2 = scmp.lt.s32.totalorder %s3327_s23, 5 }
   0xb   : > { %s4061_s24 = smov (%p36_p0, %s35_s24), 0  ;;  %s4063_s25 = smov (!%p36_p0, %s38_s25), %s3323_s3 }
   0xc   : > { %4041 = sst [smem:[#allocation6_spill]] %s4061_s24  ;;  %p549_p3 = pnand %p2867_p1, %p548_p2 }
   0xd   : > { %p40_p4 = scmp.ge.s32.totalorder %s4063_s25, 2 }
   0xe   : > { %552 = sbr.rel (%p549_p3) target bundleno = 4543 (0x11bf), region = 84 }
   0xf   : > { %s4065_s25 = smov (%p40_p4, %s4063_s25), 0 }
  0x10   : > { %4042 = sst [smem:[#allocation7_spill]] %s4065_s25 }
  0x15   : > { %p631_p5 = scmp.lt.s32.totalorder %s3315_s21, 1  ;;  %p646_p6 = scmp.lt.s32.totalorder %s3311_s20, 1 }
  0x16   : > { %s4045_s18 = sld [smem:[#allocation9_spill]]  ;;  %s4046_s7 = sld [smem:[#allocation11_spill]] }
  0x17   : > { %s4067_s21 = smov (!%p631_p5, %s3315_s21), 1  ;;  %p2881_p7 = scmp.ne.s32.totalorder %s3311_s20, 0 }
  0x18   : > { %4043 = sst [smem:[#allocation8_spill]] %s4067_s21  ;;  %s2868_s27 = sshll.u32 %s4067_s21, 3  ;;  %v680_v0 = vld [vmem:[%s4016_s6] sm:$0x1f] (!%p2881_p7)  ;;  %vm685_vm0 = vcmask (!%p2881_p7), 1044480   ;;  %v3329_v2 = vmov (!%p2881_p7), 0.0  }
  0x19   : > { %s647_s26 = scalar_select %p646_p6, %s3311_s20, 1 }
  0x1a   : > { %s3507_s25 = sshll.u32 %s4067_s21, 2  ;;  %678 = sbr.rel (%p2881_p7) target bundleno = 245 (0xf5), region = 88  ;;  %2995 = vmatprep.subr.mxu0 (!%p2881_p7), %v3329_v2  ;;  %vm3330_vm1 = vmmov (!%p2881_p7), 0   ;;  %vm681_vm2 = vcmask (!%p2881_p7), 39936   ;;  %v759_v3 = vld [vmem:[%s4011_s1] sm:$0xff] (!%p2881_p7)  ;;  %vm761_vm3 = vcmask (!%p2881_p7), 261120  }
  0x1b   : > { %s2871_s13 = sshll.u32 %s647_s26, 1  ;;  %s2940_s28 = sshll.u32 %s647_s26, 4  ;;  %2997 = vmatprep.mubr.msk.f32.mxu0 (!%p2881_p7), %vm3330_vm1, %v3329_v2  ;;  %2996 = vmatpush3.msk.msra.mxu0 (!%p2881_p7), %vm685_vm0, %v680_v0 }
  0x1c   : > { %s634_s19 = scalar_lea.vmem %s4045_s18, %s2868_s27  ;;  %s3520_s30 = scalar_lea.vmem %s4046_s7, %s2871_s13 }
  0x1d   : > { %s3525_s18 = scalar_lea.vmem %s4018_s8, %s2940_s28  ;;  %s3530_s22 = scalar_lea.vmem %s4019_s9, %s2940_s28  ;;  %v679_v1 = vld [vmem:[%s634_s19] sm:$0xff] (!%p2881_p7) }
  0x1e   : > { %s3535_s23 = scalar_lea.vmem %s4020_s10, %s2940_s28  ;;  %s2943_s14 = sshll.u32 %s647_s26, 6  ;;  %2998 = vmatmul.mubr.msk.f32.vlgmr.msra.gmra.mrb[0].mxu0 (!%p2881_p7), %vm681_vm2, %v679_v1 }
  0x1f   : > { %s673_s13 = scalar_lea.vmem %s4026_s16, %s3507_s25  ;;  %s3544_s27 = scalar_lea.vmem %s4021_s11, %s2943_s14 }
  0xf1   : > { %v755_v4 = vpop.f32.mrb[0].mxu0 }
  0xf2   : > { %v760_v5 = vadd.f32 %v759_v3, %v755_v4  ;;  %v2999_v6 = vpop.f32.mrb[1].mxu0 }
  0xf4   : > { %762 = vst.msk [vmem:[#allocation2] sm:$0xff] %vm761_vm3, %v760_v5 }
  0xf5 PF: > { %vm765_vm4 = vcmask 261120   ;;  %v3230_v14 = vld [vmem:[%s3525_s18] sm:$0xff]   ;;  %v3331_v15 = vmov 0.0   ;;  %vm3332_vm5 = vmmov 0   ;;  %v3231_v16 = vld [vmem:[%s3525_s18 + $0x8] sm:$0xff]   ;;  %v780_v19 = vlaneseq  ;;  %s3333_s14 = smov 120  }
  0xf6   : > { %3000 = vmatprep.subr.bf16.mxu0 %v3331_v15  ;;  %3004 = vmatprep.mubr.msk.bf16.mxu0 %vm3332_vm5, %v3331_v15  ;;  %v3575_v23 = vld [vmem:[%s3520_s30] sm:$0x3]  ;;  %s3334_s21 = smov 96   ;;  %s3335_s26 = smov 88   ;;  %vm855_vm6 = vcmask 64512   ;;  %vm921_vm8 = vcmask 1043456  }
  0xf7   : > { %3001 = vmatpush3.bf16.msra.mxu0 %v3230_v14  ;;  %3020 = vmatprep.subr.bf16.mxu1 %v3331_v15  ;;  %v3569_v21 = vshrl.u32 %v780_v19, 7  ;;  %s3336_s19 = smov 80   ;;  %s3337_s28 = smov 112   ;;  %v3612_v45 = vand.u32 127, %v780_v19  ;;  %v3340_v47 = vmov -1e+30  }
  0xf8   : > { %3002 = vmatprep.subr.bf16.mxu0 %v3331_v15  ;;  %3022 = vmatprep.mubr.msk.bf16.mxu1 %vm3332_vm5, %v3331_v15  ;;  %s3338_s30 = smov 72   ;;  %s3339_s18 = smov 104   ;;  %vm1314_vm9 = vcmask 130048   ;;  %vm1316_vm10 = vcmask 195584  }
  0xf9   : > { %v3572_v22 = vsub.s32 0, %v3569_v21  ;;  %vm849_vm7 = vcmp.le.s32.totalorder %v3612_v45, %v3569_v21  ;;  %s3341_s24 = smov 64   ;;  %s3342_s12 = smov 56  }
  0xfa   : > { %v850_v48 = vsel %vm849_vm7, 0.0, %v3340_v47  ;;  %s3343_s0 = smov 48   ;;  %s3344_s29 = smov 40  }
  0xfb   : > { %v3553_v7 = vld [vmem:[#allocation2] sm:$0xff]  ;;  %3003 = vmatpush3.bf16.msra.mxu0 %v3231_v16  ;;  %v783_v24 = vrot.slane %v3575_v23, %v3572_v22  ;;  %s3345_s17 = smov 8   ;;  %s3346_s3 = smov 16  }
  0xfc   : > { %v766_v8 = vsel %vm765_vm4, %v3553_v7, 0.0  ;;  %3008 = vmatprep.subr.bf16.mxu0 %v3331_v15  ;;  %s3347_s2 = smov 24   ;;  %p2909_p8 = scmp.ne.s32.totalorder %s3311_s20, 1 }
  0xfd   : > { %767 = vadd.xlane.f32.xlu0 %v766_v8  ;;  %s3349_s20 = smov (!%p2909_p8), 112   ;;  %vm3356_vm11 = vmmov (!%p2909_p8), 0   ;;  %s3370_s7 = smov (!%p2909_p8), 101  }
 0x18a   : > { %v768_v9 = vpop.xlane.xlu0 %767 }
 0x18b   : > { %v770_v10 = vmul.f32 0.03125, %v768_v9 }
 0x18d   : > { %v771_v11 = vsub.f32 %v3553_v7, %v770_v10 }
 0x18f   : > { %v772_v12 = vmul.f32 %v771_v11, %v771_v11 }
 0x191   : > { %v773_v13 = vsel %vm765_vm4, %v772_v12, 0.0 }
 0x192   : > { %774 = vadd.xlane.f32.xlu0 %v773_v13 }
 0x21f   : > { %v775_v17 = vpop.xlane.xlu0 %774 }
 0x220   : > { %v776_v18 = vmul.f32 0.03125, %v775_v17 }
 0x222   : > { %v777_v20 = vadd.f32 1e-05, %v776_v18 }
 0x224   : > { %3244 = vrsqrt.f32 %v777_v20 }
 0x22e   : > { %v3245_v25 = vpop.eup %3244 }
 0x22f   : > { %v779_v26 = vmul.f32 %v3245_v25, %v771_v11 }
 0x231   : > { %v784_v27 = vmul.f32 %v783_v24, %v779_v26 }
 0x233   : > { %v785_v28 = vpack.c.bf16 %v784_v27, %v784_v27 }
 0x235   : > { %3005 = vmatmul.mubr.msk.bf16.vlgmr.msra.gmra.mrb[0].mxu0 %vm765_vm4, %v785_v28 }
 0x236   : > { %3010 = vmatprep.mubr.msk.bf16.mxu0 %vm3332_vm5, %v3331_v15 }
 0x308   : > { %v839_v29 = vpop.f32.mrb[0].mxu0 }
 0x309   : > { %v3582_v30 = vpack.c.bf16 %v839_v29, %v839_v29  ;;  %v3006_v31 = vpop.f32.mrb[1].mxu0 }
 0x30a   : > { %v842_v32 = vpop.f32.mrb[2].mxu0 }
 0x30b   : > { %965 = vrot.lane.b32.xlu0 %v3582_v30, %s3333_s14  ;;  %853 = vrot.lane.b32.xlu1 %v3582_v30, %s3334_s21  ;;  %v3007_v33 = vpop.f32.mrb[3].mxu0  ;;  %s3363_s21 = smov (!%p2909_p8), 18   ;;  %s3371_s14 = smov (!%p2909_p8), 119  }
 0x30f   : > { %967 = vrot.lane.b32.xlu1 %v3582_v30, %s3335_s26  ;;  %s4051_s26 = sld [smem:[#allocation8_spill]] (!%p2909_p8) }
 0x313   : > { %1079 = vrot.lane.b32.xlu1 %v3582_v30, %s3336_s19  ;;  %s4048_s19 = sld [smem:[#allocation13_spill]] (!%p2909_p8) }
 0x317   : > { %1077 = vrot.lane.b32.xlu1 %v3582_v30, %s3337_s28  ;;  %s3350_s28 = smov (!%p2909_p8), 96  }
 0x31b   : > { %1191 = vrot.lane.b32.xlu1 %v3582_v30, %s3338_s30  ;;  %s3376_s30 = smov (!%p2909_p8), 65  }
 0x31f   : > { %1189 = vrot.lane.b32.xlu1 %v3582_v30, %s3339_s18  ;;  %s4052_s18 = sld [smem:[#allocation12_spill]] (!%p2909_p8) }
 0x37d   : > { %v854_v34 = vpop.permute.xlu1 %853  ;;  %v966_v39 = vpop.permute.xlu0 %965 }
 0x37e   : > { %v860_v35 = vsel %vm855_vm6, %v854_v34, 0 }
 0x37f   : > { %3009 = vmatpush3.bf16.xpose.msra.mxu0 %v860_v35 }
 0x380   : > { %3014 = vmatprep.subr.bf16.mxu0 %v3331_v15 }
 0x381   : > { %v968_v36 = vpop.permute.xlu1 %967 }
 0x382   : > { %v973_v37 = vsel %vm855_vm6, %v968_v36, 0 }
 0x383   : > { %3021 = vmatpush3.bf16.xpose.msra.mxu1 %v973_v37 }
 0x384   : > { %3032 = vmatprep.subr.bf16.mxu1 %v3331_v15 }
 0x385   : > { %v1080_v38 = vpop.permute.xlu1 %1079 }
 0x386   : > { %3011 = vmatmul.mubr.msk.bf16.vlgmr.msra.gmra.mrb[4].mxu0 %vm855_vm6, %v3582_v30  ;;  %v1085_v41 = vsel %vm855_vm6, %v1080_v38, 0 }
 0x387   : > { %3016 = vmatprep.mubr.msk.bf16.mxu0 %vm3332_vm5, %v3331_v15 }
 0x389   : > { %v1078_v40 = vpop.permute.xlu1 %1077 }
 0x38a   : > { %3023 = vmatmul.mubr.msk.bf16.vlgmr.msra.gmra.mrb[0].mxu1 %vm855_vm6, %v966_v39 }
 0x38b   : > { %3033 = vmatpush3.bf16.xpose.msra.mxu1 %v1085_v41  ;;  %3034 = vmatprep.mubr.msk.bf16.mxu1 %vm3332_vm5, %v3331_v15 }
 0x38c   : > { %3044 = vmatprep.subr.bf16.mxu1 %v3331_v15 }
 0x38d   : > { %v1192_v42 = vpop.permute.xlu1 %1191 }
 0x38e   : > { %v1197_v43 = vsel %vm855_vm6, %v1192_v42, 0 }
 0x391   : > { %v1190_v44 = vpop.permute.xlu1 %1189 }
 0x392   : > { %3035 = vmatmul.mubr.msk.bf16.vlgmr.msra.gmra.mrb[4].mxu1 %vm855_vm6, %v1078_v40 }
 0x393   : > { %3045 = vmatpush3.bf16.xpose.msra.mxu1 %v1197_v43  ;;  %3046 = vmatprep.mubr.msk.bf16.mxu1 %vm3332_vm5, %v3331_v15 }
 0x394   : > { %3056 = vmatprep.subr.bf16.mxu1 %v3331_v15 }
 0x39a   : > { %3047 = vmatmul.mubr.msk.bf16.vlgmr.msra.gmra.mrb[8].mxu1 %vm855_vm6, %v1190_v44 }
 0x39b   : > { %3060 = vmatprep.mubr.msk.bf16.mxu1 %vm3332_vm5, %v3331_v15 }
 0x459   : > { %v896_v46 = vpop.f32.mrb[4].mxu0 }
 0x45a   : > { %v902_v49 = vmul.f32 0.35355338, %v896_v46  ;;  %v3012_v50 = vpop.f32.mrb[5].mxu0 }
 0x45b   : > { %v899_v51 = vpop.f32.mrb[6].mxu0 }
 0x45c   : > { %v3013_v52 = vpop.f32.mrb[7].mxu0  ;;  %v903_v53 = vadd.f32 %v902_v49, %v850_v48 }
 0x45d   : > { %v1009_v54 = vpop.f32.mrb[0].mxu1 }
 0x45e   : > { %v1015_v55 = vmul.f32 0.35355338, %v1009_v54  ;;  %v3024_v56 = vpop.f32.mrb[1].mxu1  ;;  %v904_v57 = vsel %vm855_vm6, %v903_v53, -inf }
 0x45f   : > { %v1012_v58 = vpop.f32.mrb[2].mxu1  ;;  %905 = vmax.xlane.f32.xlu1 %v904_v57 }
 0x460   : > { %v3025_v59 = vpop.f32.mrb[3].mxu1  ;;  %v1016_v60 = vadd.f32 %v1015_v55, %v850_v48 }
 0x462   : > { %v1017_v61 = vsel %vm855_vm6, %v1016_v60, -inf }
 0x463   : > { %1018 = vmax.xlane.f32.xlu0 %v1017_v61 }
 0x465   : > { %v1121_v62 = vpop.f32.mrb[4].mxu1 }
 0x466   : > { %v1127_v63 = vmul.f32 0.35355338, %v1121_v62  ;;  %v3036_v0 = vpop.f32.mrb[5].mxu1 }
 0x467   : > { %v1124_v1 = vpop.f32.mrb[6].mxu1 }
 0x468   : > { %v3037_v2 = vpop.f32.mrb[7].mxu1  ;;  %v1128_v3 = vadd.f32 %v1127_v63, %v850_v48 }
 0x46a   : > { %v1129_v4 = vsel %vm855_vm6, %v1128_v3, -inf }
 0x46b   : > { %1130 = vmax.xlane.f32.xlu1 %v1129_v4 }
 0x46d   : > { %v1233_v5 = vpop.f32.mrb[8].mxu1 }
 0x46e   : > { %v1239_v6 = vmul.f32 0.35355338, %v1233_v5  ;;  %v3048_v8 = vpop.f32.mrb[9].mxu1 }
 0x46f   : > { %v1236_v9 = vpop.f32.mrb[10].mxu1  ;;  %v3233_v8 = vld [vmem:[%s3530_s22 + $0x8] sm:$0xff]  }
 0x470   : > { %v3049_v10 = vpop.f32.mrb[11].mxu1  ;;  %v1240_v11 = vadd.f32 %v1239_v6, %v850_v48  ;;  %v3232_v6 = vld [vmem:[%s3530_s22] sm:$0xff]   ;;  %s4050_s22 = scalar_lea.vmem (!%p2909_p8), %s4015_s5, %s3507_s25 }
 0x471   : > { %3057 = vmatpush3.bf16.msra.mxu1 %v3232_v6 }
 0x472   : > { %v1241_v12 = vsel %vm855_vm6, %v1240_v11, -inf  ;;  %3058 = vmatprep.subr.bf16.mxu1 %v3331_v15 }
 0x473   : > { %1242 = vmax.xlane.f32.xlu0 %v1241_v12 }
 0x475   : > { %3059 = vmatpush3.bf16.msra.mxu1 %v3233_v8 }
 0x476   : > { %3072 = vmatprep.subr.bf16.mxu1 %v3331_v15 }
 0x4ec   : > { %v906_v13 = vpop.xlane.xlu1 %905 }
 0x4ed   : > { %v907_v14 = vsub.f32 %v903_v53, %v906_v13 }
 0x4ef   : > { %v908_v16 = vmul.f32 1.442695, %v907_v14 }
 0x4f0   : > { %v1019_v17 = vpop.xlane.xlu0 %1018 }
 0x4f1   : > { %3246 = vpow2.f32 %v908_v16  ;;  %v1020_v18 = vsub.f32 %v1016_v60, %v1019_v17 }
 0x4f3   : > { %v1021_v19 = vmul.f32 1.442695, %v1020_v18 }
 0x4f5   : > { %3248 = vpow2.f32 %v1021_v19 }
 0x4f8   : > { %v1131_v33 = vpop.xlane.xlu1 %1130 }
 0x4f9   : > { %v1132_v34 = vsub.f32 %v1128_v3, %v1131_v33 }
 0x4fb   : > { %v3247_v20 = vpop.eup %3246  ;;  %v1133_v35 = vmul.f32 1.442695, %v1132_v34 }
 0x4fc   : > { %v910_v24 = vsel %vm855_vm6, %v3247_v20, 0.0 }
 0x4fd   : > { %911 = vadd.xlane.f32.xlu1 %v910_v24 }
 0x4ff   : > { %v3249_v25 = vpop.eup %3248 }
 0x500   : > { %v1243_v26 = vpop.xlane.xlu0 %1242  ;;  %v1023_v27 = vsel %vm855_vm6, %v3249_v25, 0.0 }
 0x501   : > { %v1244_v28 = vsub.f32 %v1240_v11, %v1243_v26  ;;  %1024 = vadd.xlane.f32.xlu0 %v1023_v27 }
 0x503   : > { %v1245_v29 = vmul.f32 1.442695, %v1244_v28 }
 0x505   : > { %3250 = vpow2.f32 %v1245_v29 }
 0x506   : > { %3252 = vpow2.f32 %v1133_v35 }
 0x50e   : > { %916 = vrot.lane.b32.xlu1 %v3582_v30, %s3341_s24  ;;  %s3351_s24 = smov (!%p2909_p8), 64  }
 0x50f   : > { %v3251_v31 = vpop.eup %3250 }
 0x510   : > { %v1247_v32 = vsel %vm855_vm6, %v3251_v31, 0.0  ;;  %v3253_v36 = vpop.eup %3252 }
 0x511   : > { %1248 = vadd.xlane.f32.xlu0 %v1247_v32  ;;  %v1135_v37 = vsel %vm855_vm6, %v3253_v36, 0.0 }
 0x527   : > { %1029 = vrot.lane.b32.xlu0 %v3582_v30, %s3342_s12 }
 0x532   : > { %1136 = vadd.xlane.f32.xlu1 %v1135_v37 }
 0x543   : > { %1141 = vrot.lane.b32.xlu1 %v3582_v30, %s3343_s0  ;;  %s4053_s0 = sld [smem:[#allocation10_spill]] (!%p2909_p8) }
 0x547   : > { %1253 = vrot.lane.b32.xlu1 %v3582_v30, %s3344_s29  ;;  %s4049_s29 = sld [smem:[#allocation14_spill]] (!%p2909_p8) }
 0x58a   : > { %v912_v38 = vpop.xlane.xlu1 %911 }
 0x58b   : > { %3254 = vrcp.f32 %v912_v38 }
 0x58e   : > { %v917_v39 = vpop.permute.xlu1 %916  ;;  %v1025_v41 = vpop.xlane.xlu0 %1024 }
 0x58f   : > { %v923_v40 = vsel %vm921_vm8, %v917_v39, 0  ;;  %3256 = vrcp.f32 %v1025_v41  ;;  %v3236_v41 = vld [vmem:[%s3544_s27] sm:$0xff]  }
 0x590   : > { %3015 = vmatpush3.bf16.msra.mxu0 %v923_v40  ;;  %v3234_v40 = vld [vmem:[%s3535_s23] sm:$0xff]  }
 0x591   : > { %3026 = vmatprep.subr.bf16.mxu0 %v3331_v15 }
 0x595   : > { %v3255_v42 = vpop.eup %3254 }
 0x596   : > { %v914_v43 = vmul.f32 %v3255_v42, %v3247_v20 }
 0x598   : > { %v915_v44 = vpack.c.bf16 %v914_v43, %v914_v43 }
 0x599   : > { %v3257_v30 = vpop.eup %3256 }
 0x59a   : > { %3017 = vmatmul.mubr.msk.bf16.vlgmr.msra.gmra.mrb[8].mxu0 %vm855_vm6, %v915_v44  ;;  %v1027_v47 = vmul.f32 %v3257_v30, %v3249_v25  ;;  %v1394_v30 = vsub.s32 1, %v3569_v21 }
 0x59b   : > { %3028 = vmatprep.mubr.msk.bf16.mxu0 %vm3332_vm5, %v3331_v15 }
 0x59c   : > { %v1028_v50 = vpack.c.bf16 %v1027_v47, %v1027_v47 }
 0x59e   : > { %v1249_v46 = vpop.xlane.xlu0 %1248 }
 0x5a2   : > { %v1030_v48 = vpop.permute.xlu0 %1029 }
 0x5a3   : > { %v1035_v49 = vsel %vm921_vm8, %v1030_v48, 0 }
 0x5a4   : > { %3027 = vmatpush3.bf16.msra.mxu0 %v1035_v49 }
 0x5a5   : > { %3038 = vmatprep.subr.bf16.mxu0 %v3331_v15 }
 0x5a7   : > { %3029 = vmatmul.mubr.msk.bf16.vlgmr.msra.gmra.mrb[12].mxu0 %vm855_vm6, %v1028_v50 }
 0x5a8   : > { %3040 = vmatprep.mubr.msk.bf16.mxu0 %vm3332_vm5, %v3331_v15 }
 0x5bf   : > { %v1137_v51 = vpop.xlane.xlu1 %1136 }
 0x5c0   : > { %3258 = vrcp.f32 %v1137_v51  ;;  %v3237_v51 = vld [vmem:[%s3544_s27 + $0x8] sm:$0xff]  }
 0x5c1   : > { %3260 = vrcp.f32 %v1249_v46  ;;  %v1395_v46 = vrot.slane %v3575_v23, %v1394_v30  ;;  %v3240_v23 = vld [vmem:[%s3544_s27 + $0x20] sm:$0xff]  }
 0x5c3   : > { %v1142_v52 = vpop.permute.xlu1 %1141 }
 0x5c4   : > { %v1147_v53 = vsel %vm921_vm8, %v1142_v52, 0  ;;  %v3238_v52 = vld [vmem:[%s3544_s27 + $0x10] sm:$0xff]  }
 0x5c5   : > { %3039 = vmatpush3.bf16.msra.mxu0 %v1147_v53  ;;  %v3239_v53 = vld [vmem:[%s3544_s27 + $0x18] sm:$0xff]  }
 0x5c6   : > { %3050 = vmatprep.subr.bf16.mxu0 %v3331_v15 }
 0x5c7   : > { %v1254_v56 = vpop.permute.xlu1 %1253 }
 0x5c8   : > { %v1259_v59 = vsel %vm921_vm8, %v1254_v56, 0  ;;  %v3243_v56 = vld [vmem:[%s3544_s27 + $0x38] sm:$0xff]  }
 0x5ca   : > { %v3259_v54 = vpop.eup %3258 }
 0x5cb   : > { %v1139_v55 = vmul.f32 %v3259_v54, %v3253_v36  ;;  %v3261_v58 = vpop.eup %3260  ;;  %v3241_v54 = vld [vmem:[%s3544_s27 + $0x28] sm:$0xff]  }
 0x5cc   : > { %v1251_v60 = vmul.f32 %v3261_v58, %v3251_v31 }
 0x5cd   : > { %v1140_v57 = vpack.c.bf16 %v1139_v55, %v1139_v55  ;;  %v3242_v55 = vld [vmem:[%s3544_s27 + $0x30] sm:$0xff]   ;;  %s4047_s27 = scalar_lea.vmem (!%p2909_p8), %s4014_s4, %s3507_s25 }
 0x5ce   : > { %v1252_v61 = vpack.c.bf16 %v1251_v60, %v1251_v60 }
 0x5cf   : > { %3041 = vmatmul.mubr.msk.bf16.vlgmr.msra.gmra.mrb[16].mxu0 %vm855_vm6, %v1140_v57 }
 0x5d0   : > { %3051 = vmatpush3.bf16.msra.mxu0 %v1259_v59  ;;  %3052 = vmatprep.mubr.msk.bf16.mxu0 %vm3332_vm5, %v3331_v15 }
 0x5d1   : > { %3064 = vmatprep.subr.bf16.mxu0 %v3331_v15 }
 0x5d7   : > { %3053 = vmatmul.mubr.msk.bf16.vlgmr.msra.gmra.mrb[20].mxu0 %vm855_vm6, %v1252_v61 }
 0x5d8   : > { %3068 = vmatprep.mubr.msk.bf16.mxu0 %vm3332_vm5, %v3331_v15  ;;  %3065 = vmatpush3.bf16.msra.mxu0 %v3234_v40 }
 0x5d9   : > { %3066 = vmatprep.subr.bf16.mxu0 %v3331_v15 }
 0x66d   : > { %v959_v62 = vpop.f32.mrb[8].mxu0 }
 0x66e   : > { %v3018_v63 = vpop.f32.mrb[9].mxu0 }
 0x66f   : > { %v962_v0 = vpop.f32.mrb[10].mxu0 }
 0x670   : > { %v3019_v1 = vpop.f32.mrb[11].mxu0 }
 0x67a   : > { %v1071_v2 = vpop.f32.mrb[12].mxu0 }
 0x67b   : > { %1302 = vrot.lane.b32.xlu0 %v1071_v2, %s3345_s17  ;;  %v3030_v3 = vpop.f32.mrb[13].mxu0  ;;  %s3352_s17 = smov (!%p2909_p8), 48  }
 0x67c   : > { %v1074_v4 = vpop.f32.mrb[14].mxu0 }
 0x67d   : > { %v3031_v5 = vpop.f32.mrb[15].mxu0 }
 0x6a2   : > { %v1183_v9 = vpop.f32.mrb[16].mxu0 }
 0x6a3   : > { %1306 = vrot.lane.b32.xlu1 %v1183_v9, %s3346_s3  ;;  %v3042_v10 = vpop.f32.mrb[17].mxu0  ;;  %s3365_s3 = smov (!%p2909_p8), 36  }
 0x6a4   : > { %v1186_v11 = vpop.f32.mrb[18].mxu0 }
 0x6a5   : > { %v3043_v12 = vpop.f32.mrb[19].mxu0 }
 0x6aa   : > { %v1295_v13 = vpop.f32.mrb[20].mxu0 }
 0x6ab   : > { %1310 = vrot.lane.b32.xlu0 %v1295_v13, %s3347_s2  ;;  %v3054_v14 = vpop.f32.mrb[21].mxu0  ;;  %v1763_v13 = vld [vmem:[%s4047_s27] sm:$0x7] (!%p2909_p8)  ;;  %s3366_s2 = smov (!%p2909_p8), 9   ;;  %s3369_s27 = smov (!%p2909_p8), 63  }
 0x6ac   : > { %v1298_v16 = vpop.f32.mrb[22].mxu0  ;;  %v3348_v14 = vmov (!%p2909_p8), 0  }
 0x6ad   : > { %v3055_v17 = vpop.f32.mrb[23].mxu0  ;;  %3266 = vset.pattern.permute.xlu1 (!%p2909_p8), %v3348_v14  ;;  %v1764_v16 = vmul.f32 (!%p2909_p8), 0.00027777778, %v1763_v13 }
 0x6af   : > { %v1765_v17 = vmax.f32 (!%p2909_p8), %v1764_v16, 0.0 }
 0x6ed   : > { %v1303_v18 = vpop.permute.xlu0 %1302 }
 0x6ee   : > { %v1313_v20 = vsel %vm855_vm6, %v959_v62, %v1303_v18  ;;  %v3699_v18 = vld [vmem:[%s4025_s15] sm:$0x3] (!%p2909_p8) }
 0x715   : > { %v1307_v19 = vpop.permute.xlu1 %1306 }
 0x716   : > { %v1315_v24 = vsel %vm1314_vm9, %v1313_v20, %v1307_v19  ;;  %v1766_v19 = vmin.f32 (!%p2909_p8), %v1765_v17, 2.0  ;;  %v1776_v20 = vrot.slane (!%p2909_p8), %v3699_v18, %v3572_v22  ;;  %v3362_v17 = vmov (!%p2909_p8), 1326507024  }
 0x71d   : > { %v1311_v25 = vpop.permute.xlu0 %1310 }
 0x71e   : > { %v1317_v26 = vsel %vm1316_vm10, %v1315_v24, %v1311_v25  ;;  %v3268_v24 = vld [vmem:[%s4048_s19] ss:$8 sps:$4 sm:$0xff] (!%p2909_p8)   ;;  %v3270_v25 = vld [vmem:[%s4048_s19 + $0x10] ss:$8 sps:$4 sm:$0xff] (!%p2909_p8)  }
 0x71f   : > { %v1318_v27 = vpack.c.bf16 %v1317_v26, %v1317_v26  ;;  %v3715_v26 = vld [vmem:[%s4049_s29] sm:$0xff] (!%p2909_p8)   ;;  %s4054_s29 = scalar_lea.vmem (!%p2909_p8), %s4053_s0, %s4051_s26  ;;  %s3374_s26 = smov (!%p2909_p8), 83  }
 0x721   : > { %3061 = vmatmul.mubr.msk.bf16.vlgmr.msra.gmra.mrb[12].mxu1 %vm765_vm4, %v1318_v27  ;;  %v1965_v27 = vld [vmem:[%s4050_s22] sm:$0x7] (!%p2909_p8)  ;;  %s3367_s22 = smov (!%p2909_p8), 27  }
 0x722   : > { %3088 = vmatprep.mubr.msk.bf16.mxu1 %vm3332_vm5, %v3331_v15  ;;  %3073 = vmatpush3.bf16.msra.mxu1 %v3236_v41 }
 0x723   : > { %3074 = vmatprep.subr.bf16.mxu1 %v3331_v15 }
 0x726   : > { %3075 = vmatpush3.bf16.msra.mxu1 %v3237_v51  ;;  %v3355_v51 = vmov (!%p2909_p8), 0.0  }
 0x727   : > { %3076 = vmatprep.subr.bf16.mxu1 %v3331_v15 }
 0x72a   : > { %3077 = vmatpush3.bf16.msra.mxu1 %v3238_v52 }
 0x72b   : > { %3078 = vmatprep.subr.bf16.mxu1 %v3331_v15 }
 0x72e   : > { %3079 = vmatpush3.bf16.msra.mxu1 %v3239_v53  ;;  %v1896_v53 = vrot.slane (!%p2909_p8), %v3699_v18, %v1394_v30 }
 0x72f   : > { %3080 = vmatprep.subr.bf16.mxu1 %v3331_v15 }
 0x732   : > { %3081 = vmatpush3.bf16.msra.mxu1 %v3240_v23  ;;  %v1966_v23 = vcvt.s32.f32 (!%p2909_p8), %v3612_v45 }
 0x733   : > { %3082 = vmatprep.subr.bf16.mxu1 %v3331_v15 }
 0x736   : > { %3083 = vmatpush3.bf16.msra.mxu1 %v3241_v54 }
 0x737   : > { %3084 = vmatprep.subr.bf16.mxu1 %v3331_v15 }
 0x73a   : > { %3085 = vmatpush3.bf16.msra.mxu1 %v3242_v55 }
 0x73b   : > { %3086 = vmatprep.subr.bf16.mxu1 %v3331_v15 }
 0x73e   : > { %3087 = vmatpush3.bf16.msra.mxu1 %v3243_v56 }
 0x73f   : > { %3098 = vmatprep.subr.bf16.mxu1 (!%p2909_p8), %v3355_v51 }
 0x7f4   : > { %v1372_v28 = vpop.f32.mrb[12].mxu1 }
 0x7f5   : > { %v3658_v29 = vadd.f32 %v1372_v28, %v3553_v7  ;;  %v3062_v31 = vpop.f32.mrb[13].mxu1  ;;  %v3235_v7 = vld [vmem:[%s3535_s23 + $0x8] sm:$0xff]   ;;  %s3353_s23 = smov (!%p2909_p8), 16   ;;  %v1967_v28 = vmul.f32 (!%p2909_p8), 3.1415927, %v1965_v27 }
 0x7f6   : > { %v1375_v32 = vpop.f32.mrb[14].mxu1  ;;  %3067 = vmatpush3.bf16.msra.mxu0 %v3235_v7 }
 0x7f7   : > { %v3063_v33 = vpop.f32.mrb[15].mxu1  ;;  %v1379_v34 = vsel %vm765_vm4, %v3658_v29, 0.0  ;;  %3092 = vmatprep.subr.bf16.mxu0 (!%p2909_p8), %v3355_v51 }
 0x7f8   : > { %1380 = vadd.xlane.f32.xlu1 %v1379_v34 }
 0x809   : > { %1769 = vperm.xlu1 (!%p2909_p8), %3266, %v1766_v19  }
 0x80d   : > { %1779 = vrot.lane.b32.xlu1 (!%p2909_p8), %v1776_v20, %s3349_s20 }
 0x811   : > { %1710 = vrot.lane.b32.xlu1 (!%p2909_p8), %v3268_v24, %s3350_s28 }
 0x815   : > { %1712 = vrot.lane.b32.xlu1 (!%p2909_p8), %v3270_v25, %s3350_s28 }
 0x819   : > { %1794 = vrot.lane.b32.xlu1 (!%p2909_p8), %v1776_v20, %s3351_s24 }
 0x81d   : > { %1841 = vrot.lane.b32.xlu1 (!%p2909_p8), %v3715_v26, %s3349_s20  ;;  %s3372_s20 = smov (!%p2909_p8), 110  }
 0x821   : > { %1888 = vrot.lane.b32.xlu1 (!%p2909_p8), %v1776_v20, %s3352_s17  ;;  %s3364_s17 = smov (!%p2909_p8), 54  }
 0x825   : > { %1903 = vrot.lane.b32.xlu1 (!%p2909_p8), %v3268_v24, %s3351_s24 }
 0x829   : > { %1907 = vrot.lane.b32.xlu1 (!%p2909_p8), %v3270_v25, %s3351_s24 }
 0x82d   : > { %1916 = vrot.lane.b32.xlu1 (!%p2909_p8), %v1776_v20, %s3353_s23 }
 0x831   : > { %1970 = vperm.xlu1 (!%p2909_p8), %3266, %v1967_v28  }
 0x885   : > { %v1381_v35 = vpop.xlane.xlu1 %1380 }
 0x886   : > { %v1382_v36 = vmul.f32 0.03125, %v1381_v35 }
 0x888   : > { %v1383_v37 = vsub.f32 %v3658_v29, %v1382_v36 }
 0x889   : > { %v1770_v31 = vpop.permute.xlu1 (!%p2909_p8), %1769 }
 0x88a   : > { %v1384_v38 = vmul.f32 %v1383_v37, %v1383_v37  ;;  %v1778_v7 = vmul.f32 (!%p2909_p8), %v1776_v20, %v1770_v31 }
 0x88c   : > { %v1385_v39 = vsel %vm765_vm4, %v1384_v38, 0.0 }
 0x88d   : > { %1386 = vadd.xlane.f32.xlu0 %v1385_v39  ;;  %v1780_v32 = vpop.permute.xlu1 (!%p2909_p8), %1779 }
 0x88e   : > { %v1782_v41 = vadd.f32 (!%p2909_p8), %v1780_v32, %v1778_v7 }
 0x891   : > { %v3726_v35 = vpop.permute.xlu1 (!%p2909_p8), %1710 }
 0x895   : > { %v3733_v39 = vpop.permute.xlu1 (!%p2909_p8), %1712 }
 0x899   : > { %v3735_v40 = vpop.permute.xlu1 (!%p2909_p8), %1794 }
 0x91a   : > { %v1387_v42 = vpop.xlane.xlu0 %1386 }
 0x91b   : > { %v1388_v43 = vmul.f32 0.03125, %v1387_v42  ;;  %v3737_v42 = vpop.permute.xlu1 (!%p2909_p8), %1841 }
 0x91d   : > { %v1389_v44 = vadd.f32 1e-05, %v1388_v43  ;;  %v1783_v43 = vmax.f32 (!%p2909_p8), %v1782_v41, 0.0 }
 0x91f   : > { %3262 = vrsqrt.f32 %v1389_v44  ;;  %v3739_v44 = vpop.permute.xlu1 (!%p2909_p8), %1888 }
 0x929   : > { %v3263_v47 = vpop.eup %3262 }
 0x92a   : > { %v1391_v48 = vmul.f32 %v3263_v47, %v1383_v37  ;;  %v3741_v47 = vpop.permute.xlu1 (!%p2909_p8), %1903 }
 0x92c   : > { %v1396_v49 = vmul.f32 %v1395_v46, %v1391_v48  ;;  %v1784_v46 = vpack.c.bf16 (!%p2909_p8), %v1783_v43, %v1783_v43  ;;  %v3273_v48 = vld [vmem:[%s4048_s19 + $0x4] ss:$8 sps:$4 sm:$0xff] (!%p2909_p8)  }
 0x92e   : > { %v1397_v50 = vpack.c.bf16 %v1396_v49, %v1396_v49  ;;  %v3747_v49 = vpop.permute.xlu1 (!%p2909_p8), %1907 }
 0x930   : > { %3069 = vmatmul.mubr.msk.bf16.vlgmr.msra.gmra.mrb[24].mxu0 %vm765_vm4, %v1397_v50  ;;  %v3274_v50 = vld [vmem:[%s4048_s19 + $0x14] ss:$8 sps:$4 sm:$0xff] (!%p2909_p8)  }
 0x931   : > { %3094 = vmatprep.mubr.msk.bf16.mxu0 (!%p2909_p8), %vm3356_vm11, %v3355_v51 }
 0x932   : > { %v3755_v52 = vpop.permute.xlu1 (!%p2909_p8), %1916 }
 0x936   : > { %v1971_v54 = vpop.permute.xlu1 (!%p2909_p8), %1970 }
 0x937   : > { %v3767_v55 = vmul.f32 (!%p2909_p8), %v1971_v54, %v1966_v23 }
 0x939   : > { %v1977_v56 = vand.u32 (!%p2909_p8), 2139095040, %v3767_v55  ;;  %v1974_v30 = vand.u32 (!%p2909_p8), 2147483647, %v3767_v55  ;;  %vm1976_vm3 = vcmp.lt.s32.totalorder (!%p2909_p8), %v3767_v55, 0 }
 0x93b   : > { %v1978_v21 = vshrl.u32 (!%p2909_p8), %v1977_v56, 23  ;;  %vm1975_vm5 = vcmp.le.f32.partialorder (!%p2909_p8), %v1974_v30, 0.7853982 }
 0xa03   : > { %v1451_v57 = vpop.f32.mrb[24].mxu0 }
 0xa04   : > { %v1457_v58 = vmul.f32 %v1451_v57, %v1451_v57  ;;  %v3070_v59 = vpop.f32.mrb[25].mxu0 }
 0xa05   : > { %v1454_v60 = vpop.f32.mrb[26].mxu0  ;;  %v1981_v59 = vand.u32 (!%p2909_p8), 8388607, %v1974_v30 }
 0xa06   : > { %v1458_v61 = vmul.f32 %v1457_v58, %v1451_v57  ;;  %v3071_v62 = vpop.f32.mrb[27].mxu0 }
 0xa07   : > { %v1982_v62 = vor.u32 (!%p2909_p8), 8388608, %v1981_v59 }
 0xa08   : > { %v1459_v63 = vmul.f32 0.044715, %v1458_v61 }
 0xa09   : > { %v2022_v20 = vshll.u32 (!%p2909_p8), %v1982_v62, 8 }
 0xa0a   : > { %v1460_v0 = vadd.f32 %v1459_v63, %v1451_v57 }
 0xa0c   : > { %v1461_v1 = vmul.f32 0.7978846, %v1460_v0 }
 0xa0e   : > { %3264 = vtanh.f32 %v1461_v1  ;;  %v3357_v1 = vmov (!%p2909_p8), 683565275  }
 0xa18   : > { %v3265_v2 = vpop.eup %3264 }
 0xa19   : > { %v1463_v3 = vadd.f32 1.0, %v3265_v2 }
 0xa1b   : > { %v1464_v4 = vmul.f32 0.5, %v1463_v3  ;;  %v3358_v3 = vmov (!%p2909_p8), 2475754826  }
 0xa1d   : > { %v1465_v5 = vmul.f32 %v1464_v4, %v1451_v57  ;;  %v2922_v57 = vadd.s32 (!%p2909_p8), 4294967169, %v1978_v21 }
 0xa1f   : > { %v1466_v6 = vpack.c.bf16 %v1465_v5, %v1465_v5  ;;  %v1984_v58 = vadd.s32 (!%p2909_p8), 1, %v2922_v57  ;;  %v3359_v5 = vmov (!%p2909_p8), 2131351028  }
 0xa21   : > { %3089 = vmatmul.mubr.bf16.vlgmr.msra.gmra.mrb[16].mxu1 %v1466_v6  ;;  %vm1985_vm12 = vcmp.gt.s32.totalorder (!%p2909_p8), %v1984_v58, 0 }
 0xa22   : > { %3099 = vmatpush3.bf16.msra.mxu1 (!%p2909_p8), %v3268_v24  ;;  %3102 = vmatprep.mubr.msk.bf16.mxu1 (!%p2909_p8), %vm3356_vm11, %v3355_v51  ;;  %v1986_v60 = vsel (!%p2909_p8), %vm1985_vm12, %v1984_v58, 0 }
 0xa23   : > { %3100 = vmatprep.subr.bf16.mxu1 (!%p2909_p8), %v3355_v51  ;;  %v1988_v61 = vand.u32 (!%p2909_p8), 31, %v1986_v60  ;;  %v1987_v63 = vshrl.u32 (!%p2909_p8), %v1986_v60, 5 }
 0xa25   : > { %v1989_v0 = vsub.s32 (!%p2909_p8), 32, %v1988_v61  ;;  %v1991_v2 = vshll.u32 (!%p2909_p8), %v3357_v1, %v1988_v61  ;;  %v1994_v4 = vshll.u32 (!%p2909_p8), %v3358_v3, %v1988_v61  ;;  %v1997_v6 = vshll.u32 (!%p2909_p8), %v3359_v5, %v1988_v61 }
 0xa26   : > { %3101 = vmatpush3.bf16.msra.mxu1 (!%p2909_p8), %v3270_v25  ;;  %vm2006_vm13 = vcmp.lt.s32.totalorder (!%p2909_p8), %v1987_v63, 1  ;;  %vm2009_vm14 = vcmp.lt.s32.totalorder (!%p2909_p8), %v1987_v63, 4  ;;  %vm2007_vm15 = vcmp.lt.s32.totalorder (!%p2909_p8), %v1987_v63, 2  ;;  %vm2008_vm0 = vcmp.lt.s32.totalorder (!%p2909_p8), %v1987_v63, 3 }
 0xa27   : > { %3114 = vmatprep.subr.bf16.mxu1 (!%p2909_p8), %v3355_v51  ;;  %v1995_v13 = vshrl.u32 (!%p2909_p8), %v3359_v5, %v1989_v0  ;;  %v2004_v19 = vshrl.u32 (!%p2909_p8), %v3362_v17, %v1989_v0 }
 0xa29   : > { %v1996_v25 = vor.u32 (!%p2909_p8), %v1995_v13, %v1994_v4 }
 0xaf1   : > { %1576 = sbr.rel (%p2909_p8) target bundleno = 4543 (0x11bf), region = 92 }
 0xaf4   : > { %v1565_v8 = vpop.f32.mrb[16].mxu1 }
 0xaf5   : > { %v1571_v15 = vadd.f32 %v1565_v8, %v3658_v29  ;;  %v3090_v9 = vpop.f32.mrb[17].mxu1  ;;  %v3354_v29 = vmov (!%p2909_p8), 1   ;;  %v3360_v8 = vmov (!%p2909_p8), 2102212464  }
 0xaf6   : > { %v1568_v10 = vpop.f32.mrb[18].mxu1  ;;  %3267 = vset.pattern.permute.xlu0 (!%p2909_p8), %v3354_v29  ;;  %v3361_v9 = vmov (!%p2909_p8), 920167782   ;;  %v1998_v14 = vshrl.u32 (!%p2909_p8), %v3360_v8, %v1989_v0 }
 0xaf7   : > { %1572 = vst.msk [vmem:[#allocation2] sm:$0xff] %vm765_vm4, %v1571_v15  ;;  %v3091_v11 = vpop.f32.mrb[19].mxu1  ;;  %v1578_v12 = vsel (!%p2909_p8), %vm765_vm4, %v1571_v15, 0.0  ;;  %v2003_v10 = vshll.u32 (!%p2909_p8), %v3361_v9, %v1988_v61  ;;  %v2001_v16 = vshrl.u32 (!%p2909_p8), %v3361_v9, %v1989_v0 }
 0xaf8   : > { %1579 = vadd.xlane.f32.xlu0 %v1578_v12  ;;  %v1990_v11 = vshrl.u32 %v3357_v1, %v1989_v0  ;;  %v1992_v12 = vshrl.u32 %v3358_v3, %v1989_v0  ;;  %v1999_v27 = vor.u32 %v1998_v14, %v1997_v6 }
 0xaf9   : > { %v2005_v29 = vor.u32 %v2004_v19, %v2003_v10 }
 0xafa   : > { %v1993_v24 = vor.u32 %v1992_v12, %v1991_v2  ;;  %v2011_v32 = vsel %vm2009_vm14, %v1999_v27, 2102212464 }
 0xafb   : > { %v2019_v7 = vsel %vm2009_vm14, %v2005_v29, 1326507024 }
 0xafc   : > { %v2010_v31 = vsel %vm2006_vm13, %v1990_v11, %v1993_v24 }
 0xb85   : > { %v1580_v33 = vpop.xlane.xlu0 %1579 }
 0xb86   : > { %v1581_v34 = vmul.f32 0.03125, %v1580_v33  ;;  %v2014_v33 = vsel %vm2006_vm13, %v1993_v24, %v1996_v25 }
 0xb88   : > { %v3728_v36 = vsub.f32 %v1571_v15, %v1581_v34  ;;  %v2000_v15 = vshll.u32 %v3360_v8, %v1988_v61  ;;  %v2018_v34 = vsel %vm2006_vm13, %v1996_v25, %v1999_v27 }
 0xb8a   : > { %v1583_v37 = vmul.f32 %v3728_v36, %v3728_v36 }
 0xb8c   : > { %v1584_v38 = vsel %vm765_vm4, %v1583_v37, 0.0  ;;  %v2012_v37 = vsel %vm2008_vm0, %v1996_v25, %v2011_v32 }
 0xb8d   : > { %1585 = vadd.xlane.f32.xlu0 %v1584_v38 }
 0xba3   : > { %1786 = vrot.lane.b32.xlu0 %v1784_v46, %s3350_s28  ;;  %v2013_v46 = vsel %vm2007_vm15, %v2010_v31, %v2012_v37  ;;  %s3375_s28 = smov 74  }
 0xba4   : > { %v2029_v57 = vmul.u32 %v2022_v20, %v2013_v46 }
 0xba7   : > { %1905 = vrot.lane.b32.xlu0 %v3273_v48, %s3351_s24 }
 0xbab   : > { %1909 = vrot.lane.b32.xlu0 %v3274_v50, %s3351_s24 }
 0xbaf   : > { %1918 = vrot.lane.b32.xlu0 %v1896_v53, %s3353_s23  ;;  %s3368_s23 = smov 45  }
 0xbb3   : > { %2182 = vperm.xlu0 %3267, %v1967_v28   ;;  %v2002_v28 = vor.u32 %v2001_v16, %v2000_v15 }
 0xbb5   : > { %v2015_v38 = vsel %vm2009_vm14, %v2002_v28, 920167782  ;;  %v2020_v43 = vsel %vm2008_vm0, %v2002_v28, %v2019_v7 }
 0xbb6   : > { %v2016_v41 = vsel %vm2008_vm0, %v1999_v27, %v2015_v38  ;;  %v2021_v50 = vsel %vm2007_vm15, %v2018_v34, %v2020_v43  ;;  %vm2066_vm0 = vweird.f32 %v3767_v55 }
 0xbb7   : > { %v2017_v48 = vsel %vm2007_vm15, %v2014_v33, %v2016_v41  ;;  %v3788_v53 = vmul.u32.u64.low %v2022_v20, %v2021_v50  ;;  %v3789_v54 = vmul.u32.u64.high %v2022_v20, %v2021_v50, %v3788_v53 }
 0xbb8   : > { %v3791_v56 = vmul.u32.u64.low %v2022_v20, %v2017_v48  ;;  %v3792_v21 = vmul.u32.u64.high %v2022_v20, %v2017_v48, %v3791_v56 }
 0xbba   : > { %vm2031_vm1 = vc.u32 %v3789_v54, %v3791_v56  ;;  %v2032_v58 = vadd.s32 1, %v3792_v21  ;;  %v2030_v10 = vadd.s32 %v3791_v56, %v3789_v54 }
 0xbbc   : > { %v2033_v59 = vsel %vm2031_vm1, %v2032_v58, %v3792_v21 }
 0xbbd   : > { %v2034_v60 = vadd.s32 %v2033_v59, %v2029_v57 }
 0xbbf   : > { %v2035_v61 = vadd.s32 536870912, %v2034_v60 }
 0xbc1   : > { %v2036_v62 = vshrl.u32 %v2035_v61, 30 }
 0xbc3   : > { %v2037_v63 = vshll.u32 %v2036_v62, 30  ;;  %v2060_v34 = vsub.s32 4, %v2036_v62 }
 0xbc5   : > { %v2038_v0 = vsub.s32 %v2034_v60, %v2037_v63  ;;  %v2061_v37 = vsel %vm1976_vm3, %v2060_v34, %v2036_v62 }
 0xbc6   : > { %v2063_v38 = vsel %vm1975_vm5, 0, %v2061_v37 }
 0xbc7   : > { %v2040_v2 = vsub.s32 0, %v2038_v0  ;;  %v2170_v7 = vadd.s32 3, %v2063_v38  ;;  %v2067_v41 = vand.u32 3, %v2063_v38 }
 0xbc9   : > { %v2923_v4 = vmin.u32 %v2040_v2, %v2038_v0  ;;  %v2171_v43 = vand.u32 3, %v2170_v7  ;;  %vm2072_vm7 = vcmp.eq.s32.totalorder %v2067_v41, 2  ;;  %vm2069_vm13 = vcmp.eq.s32.totalorder %v2067_v41, 0 }
 0xbca   : > { %vm2068_vm15 = vcmp.lt.s32.totalorder %v2067_v41, 2 }
 0xbcb   : > { %v2042_v6 = vclz %v2923_v4  ;;  %vm2173_vm10 = vcmp.eq.s32.totalorder %v2171_v43, 0  ;;  %vm2176_vm12 = vcmp.eq.s32.totalorder %v2171_v43, 2  ;;  %vm2172_vm14 = vcmp.lt.s32.totalorder %v2171_v43, 2 }
 0xbcd   : > { %v2924_v15 = vadd.s32 4294967294, %v2042_v6  ;;  %v2910_v6 = vld [vmem:[%s4052_s18] ss:$0 sm:$0xff] }
 0xbcf   : > { %vm2925_vm2 = vcmp.lt.s32.totalorder %v2924_v15, 0 }
 0xbd0   : > { %v2045_v11 = vsel %vm2925_vm2, 0, %v2924_v15 }
 0xbd1   : > { %v2046_v12 = vsub.s32 32, %v2045_v11  ;;  %v2047_v13 = vshll.u32 %v2038_v0, %v2045_v11  ;;  %v2050_v14 = vsub.s32 4294967266, %v2045_v11 }
 0xbd3   : > { %v2048_v16 = vshrl.u32 %v2030_v10, %v2046_v12  ;;  %v2051_v19 = vadd.s32 127, %v2050_v14  ;;  %v1598_v14 = vld [vmem:[%s4054_s29] sm:$0x1] }
 0xbd5   : > { %v2049_v20 = vor.u32 %v2048_v16, %v2047_v13  ;;  %v2052_v24 = vshll.u32 %v2051_v19, 23 }
 0xbd7   : > { %v2053_v25 = vor.u32 4788187, %v2052_v24  ;;  %v2056_v27 = vcvt.s32.f32 %v2049_v20 }
 0xbd9   : > { %v2054_v28 = vand.u32 2147483647, %v2053_v25 }
 0xbdb   : > { %v2057_v29 = vmul.f32 %v2056_v27, %v2054_v28 }
 0xbdd   : > { %v2058_v31 = vxor.u32 2147483648, %v2057_v29 }
 0xbdf   : > { %v2059_v32 = vsel %vm1976_vm3, %v2058_v31, %v2057_v29 }
 0xbe0   : > { %v2062_v33 = vsel %vm1975_vm5, %v3767_v55, %v2059_v32 }
 0xbe1   : > { %3275 = vcosq.f32 %v2062_v33 }
 0xbe2   : > { %3277 = vsinq.f32 %v2062_v33 }
 0xbeb   : > { %v3276_v46 = vpop.eup %3275 }
 0xbec   : > { %v3278_v48 = vpop.eup %3277  ;;  %v2073_v50 = vxor.u32 2147483648, %v3276_v46 }
 0xbed   : > { %v2070_v30 = vxor.u32 2147483648, %v3278_v48 }
 0xbee   : > { %v2178_v53 = vsel %vm2176_vm12, %v2073_v50, %v3278_v48  ;;  %v2074_v54 = vsel %vm2072_vm7, %v2073_v50, %v3278_v48 }
 0xbef   : > { %v2175_v56 = vsel %vm2173_vm10, %v3276_v46, %v2070_v30  ;;  %v2071_v21 = vsel %vm2069_vm13, %v3276_v46, %v2070_v30 }
 0xbf0   : > { %v2179_v57 = vsel %vm2172_vm14, %v2175_v56, %v2178_v53  ;;  %v2075_v58 = vsel %vm2068_vm15, %v2071_v21, %v2074_v54 }
 0xbf1   : > { %v3803_v59 = vsel %vm2066_vm0, nan, %v2179_v57  ;;  %v3807_v60 = vsel %vm2066_vm0, nan, %v2075_v58 }
 0xbf2   : > { %2395 = vrot.lane.b32.xlu1 %v3803_v59, %s3363_s21 }
 0xbf6   : > { %2410 = vrot.lane.b32.xlu1 %v3807_v60, %s3363_s21 }
 0xc1a   : > { %v1586_v61 = vpop.xlane.xlu0 %1585 }
 0xc1b   : > { %v1587_v55 = vmul.f32 0.03125, %v1586_v61 }
 0xc1d   : > { %v1588_v62 = vadd.f32 1e-05, %v1587_v55 }
 0xc1e   : > { %v3811_v63 = vpop.permute.xlu0 %1786 }
 0xc1f   : > { %3279 = vrsqrt.f32 %v1588_v62 }
 0xc22   : > { %v3813_v0 = vpop.permute.xlu0 %1905 }
 0xc26   : > { %v3815_v2 = vpop.permute.xlu0 %1909 }
 0xc29   : > { %v3280_v4 = vpop.eup %3279 }
 0xc2a   : > { %v1590_v15 = vmul.f32 %v3280_v4, %v3728_v36  ;;  %v3821_v11 = vpop.permute.xlu0 %1918 }
 0xc2c   : > { %v1597_v10 = vmul.f32 %v2910_v6, %v1590_v15 }
 0xc2e   : > { %v1599_v12 = vpack.c.bf16 %v1597_v10, %v1597_v10 }
 0xc30   : > { %v1604_v13 = vsel %vm921_vm8, %v1599_v12, 0 }
 0xc31   : > { %3093 = vmatpush3.bf16.msra.mxu0 %v1604_v13 }
 0xc32   : > { %v2183_v16 = vpop.permute.xlu0 %2182  ;;  %3106 = vmatprep.subr.bf16.mxu0 %v3355_v51 }
 0xc33   : > { %v3832_v19 = vmul.f32 %v2183_v16, %v1966_v23 }
 0xc34   : > { %3095 = vmatmul.mubr.msk.bf16.vlgmr.msra.gmra.mrb[0].mxu0 %vm855_vm6, %v1598_v14 }
 0xc35   : > { %v2189_v36 = vand.u32 2139095040, %v3832_v19  ;;  %3107 = vmatpush3.bf16.msra.mxu0 %v3726_v35  ;;  %3110 = vmatprep.mubr.msk.bf16.mxu0 %vm3356_vm11, %v3355_v51  ;;  %v2186_v24 = vand.u32 2147483647, %v3832_v19  ;;  %vm2188_vm10 = vcmp.lt.s32.totalorder %v3832_v19, 0 }
 0xc36   : > { %3108 = vmatprep.subr.bf16.mxu0 %v3355_v51 }
 0xc37   : > { %v2190_v20 = vshrl.u32 %v2189_v36, 23  ;;  %v2193_v23 = vand.u32 8388607, %v2186_v24  ;;  %vm2187_vm12 = vcmp.le.f32.partialorder %v2186_v24, 0.7853982 }
 0xc39   : > { %v2930_v25 = vadd.s32 4294967169, %v2190_v20  ;;  %3109 = vmatpush3.bf16.msra.mxu0 %v3733_v39  ;;  %v2194_v28 = vor.u32 8388608, %v2193_v23 }
 0xc3a   : > { %3120 = vmatprep.subr.bf16.mxu0 %v3355_v51 }
 0xc3b   : > { %v2196_v45 = vadd.s32 1, %v2930_v25  ;;  %v2234_v50 = vshll.u32 %v2194_v28, 8 }
 0xc3d   : > { %vm2197_vm6 = vcmp.gt.s32.totalorder %v2196_v45, 0 }
 0xc3e   : > { %v2198_v27 = vsel %vm2197_vm6, %v2196_v45, 0 }
 0xc3f   : > { %v2200_v35 = vand.u32 31, %v2198_v27  ;;  %v2199_v29 = vshrl.u32 %v2198_v27, 5 }
 0xc41   : > { %v2201_v31 = vsub.s32 32, %v2200_v35  ;;  %v2203_v32 = vshll.u32 %v3357_v1, %v2200_v35  ;;  %v2206_v33 = vshll.u32 %v3358_v3, %v2200_v35  ;;  %v2209_v34 = vshll.u32 %v3359_v5, %v2200_v35 }
 0xc42   : > { %v2212_v39 = vshll.u32 %v3360_v8, %v2200_v35  ;;  %v2215_v37 = vshll.u32 %v3361_v9, %v2200_v35  ;;  %vm2218_vm8 = vcmp.lt.s32.totalorder %v2199_v29, 1  ;;  %vm2221_vm1 = vcmp.lt.s32.totalorder %v2199_v29, 4 }
 0xc43   : > { %v2202_v38 = vshrl.u32 %v3357_v1, %v2201_v31  ;;  %v2204_v7 = vshrl.u32 %v3358_v3, %v2201_v31  ;;  %v2207_v41 = vshrl.u32 %v3359_v5, %v2201_v31  ;;  %v2210_v43 = vshrl.u32 %v3360_v8, %v2201_v31 }
 0xc44   : > { %v2213_v46 = vshrl.u32 %v3361_v9, %v2201_v31  ;;  %v2216_v48 = vshrl.u32 %v3362_v17, %v2201_v31  ;;  %vm2219_vm2 = vcmp.lt.s32.totalorder %v2199_v29, 2  ;;  %vm2220_vm3 = vcmp.lt.s32.totalorder %v2199_v29, 3 }
 0xc45   : > { %v2205_v30 = vor.u32 %v2204_v7, %v2203_v32  ;;  %v2208_v53 = vor.u32 %v2207_v41, %v2206_v33  ;;  %v2211_v54 = vor.u32 %v2210_v43, %v2209_v34 }
 0xc46   : > { %v2214_v56 = vor.u32 %v2213_v46, %v2212_v39  ;;  %v2217_v21 = vor.u32 %v2216_v48, %v2215_v37 }
 0xc47   : > { %v2222_v1 = vsel %vm2218_vm8, %v2202_v38, %v2205_v30  ;;  %v2223_v3 = vsel %vm2221_vm1, %v2211_v54, 2102212464  ;;  %v2226_v57 = vsel %vm2218_vm8, %v2205_v30, %v2208_v53  ;;  %v2230_v5 = vsel %vm2218_vm8, %v2208_v53, %v2211_v54 }
 0xc48   : > { %v2224_v58 = vsel %vm2220_vm3, %v2208_v53, %v2223_v3  ;;  %v2227_v8 = vsel %vm2221_vm1, %v2214_v56, 920167782  ;;  %v2231_v61 = vsel %vm2221_vm1, %v2217_v21, 1326507024  ;;  %vm2278_vm1 = vweird.f32 %v3832_v19 }
 0xc49   : > { %v2228_v9 = vsel %vm2220_vm3, %v2211_v54, %v2227_v8  ;;  %v2232_v55 = vsel %vm2220_vm3, %v2214_v56, %v2231_v61  ;;  %v2225_v17 = vsel %vm2219_vm2, %v2222_v1, %v2224_v58 }
 0xc4a   : > { %v2229_v62 = vsel %vm2219_vm2, %v2226_v57, %v2228_v9  ;;  %v2233_v4 = vsel %vm2219_vm2, %v2230_v5, %v2232_v55  ;;  %v2241_v13 = vmul.u32 %v2234_v50, %v2225_v17  ;;  %vm1911_vm2 = vcmask 523264  }
 0xc4b   : > { %v3856_v6 = vmul.u32.u64.low %v2234_v50, %v2233_v4  ;;  %v3857_v15 = vmul.u32.u64.high %v2234_v50, %v2233_v4, %v3856_v6  ;;  %v3859_v10 = vmul.u32.u64.low %v2234_v50, %v2229_v62  ;;  %v3860_v12 = vmul.u32.u64.high %v2234_v50, %v2229_v62, %v3859_v10 }
 0xc4d   : > { %vm2243_vm5 = vc.u32 %v3857_v15, %v3859_v10  ;;  %v2244_v14 = vadd.s32 1, %v3860_v12  ;;  %v2242_v31 = vadd.s32 %v3859_v10, %v3857_v15 }
 0xc4f   : > { %v2245_v16 = vsel %vm2243_vm5, %v2244_v14, %v3860_v12 }
 0xc50   : > { %v2246_v36 = vadd.s32 %v2245_v16, %v2241_v13 }
 0xc52   : > { %v2247_v20 = vadd.s32 536870912, %v2246_v36 }
 0xc54   : > { %v2248_v25 = vshrl.u32 %v2247_v20, 30  ;;  %v1913_v20 = vsel %vm1911_vm2, %v3747_v49, %v3815_v2 }
 0xc56   : > { %v2249_v45 = vshll.u32 %v2248_v25, 30  ;;  %v2272_v50 = vsub.s32 4, %v2248_v25 }
 0xc58   : > { %v2250_v23 = vsub.s32 %v2246_v36, %v2249_v45  ;;  %v2273_v54 = vsel %vm2188_vm10, %v2272_v50, %v2248_v25  ;;  %v1912_v36 = vsel %vm1911_vm2, %v3741_v47, %v3813_v0  ;;  %v1920_v50 = vsel %vm1314_vm9, %v3755_v52, %v3821_v11 }
 0xc59   : > { %v2275_v1 = vsel %vm2187_vm12, 0, %v2273_v54 }
 0xc5a   : > { %v2252_v27 = vsub.s32 0, %v2250_v23  ;;  %v2382_v3 = vadd.s32 3, %v2275_v1  ;;  %v2279_v5 = vand.u32 3, %v2275_v1 }
 0xc5c   : > { %v2931_v35 = vmin.u32 %v2252_v27, %v2250_v23  ;;  %v2383_v57 = vand.u32 3, %v2382_v3  ;;  %vm2284_vm14 = vcmp.eq.s32.totalorder %v2279_v5, 2  ;;  %vm2281_vm0 = vcmp.eq.s32.totalorder %v2279_v5, 0 }
 0xc5d   : > { %vm2280_vm8 = vcmp.lt.s32.totalorder %v2279_v5, 2 }
 0xc5e   : > { %v2254_v28 = vclz %v2931_v35  ;;  %vm2388_vm13 = vcmp.eq.s32.totalorder %v2383_v57, 2  ;;  %vm2385_vm15 = vcmp.eq.s32.totalorder %v2383_v57, 0  ;;  %vm2384_vm6 = vcmp.lt.s32.totalorder %v2383_v57, 2 }
 0xc60   : > { %v2932_v29 = vadd.s32 4294967294, %v2254_v28 }
 0xc62   : > { %vm2933_vm7 = vcmp.lt.s32.totalorder %v2932_v29, 0 }
 0xc63   : > { %v2257_v32 = vsel %vm2933_vm7, 0, %v2932_v29 }
 0xc64   : > { %v2258_v33 = vsub.s32 32, %v2257_v32  ;;  %v2259_v34 = vshll.u32 %v2250_v23, %v2257_v32  ;;  %v2262_v39 = vsub.s32 4294967266, %v2257_v32 }
 0xc66   : > { %v2260_v37 = vshrl.u32 %v2242_v31, %v2258_v33  ;;  %v2263_v38 = vadd.s32 127, %v2262_v39 }
 0xc68   : > { %v2261_v7 = vor.u32 %v2260_v37, %v2259_v34  ;;  %v2264_v41 = vshll.u32 %v2263_v38, 23 }
 0xc6a   : > { %v2265_v43 = vor.u32 4788187, %v2264_v41  ;;  %v2268_v46 = vcvt.s32.f32 %v2261_v7  ;;  %v2396_v7 = vpop.permute.xlu1 %2395 }
 0xc6c   : > { %v2266_v48 = vand.u32 2147483647, %v2265_v43 }
 0xc6e   : > { %v2269_v30 = vmul.f32 %v2268_v46, %v2266_v48  ;;  %v2411_v41 = vpop.permute.xlu1 %2410 }
 0xc70   : > { %v2270_v53 = vxor.u32 2147483648, %v2269_v30 }
 0xc72   : > { %v2271_v56 = vsel %vm2188_vm10, %v2270_v53, %v2269_v30 }
 0xc73   : > { %v2274_v21 = vsel %vm2187_vm12, %v3832_v19, %v2271_v56 }
 0xc74   : > { %3281 = vcosq.f32 %v2274_v21 }
 0xc75   : > { %3283 = vsinq.f32 %v2274_v21 }
 0xc7e   : > { %v3282_v58 = vpop.eup %3281 }
 0xc7f   : > { %v3284_v8 = vpop.eup %3283  ;;  %v2285_v61 = vxor.u32 2147483648, %v3282_v58 }
 0xc80   : > { %v2282_v9 = vxor.u32 2147483648, %v3284_v8 }
 0xc81   : > { %v2390_v24 = vsel %vm2388_vm13, %v2285_v61, %v3284_v8  ;;  %v2286_v55 = vsel %vm2284_vm14, %v2285_v61, %v3284_v8 }
 0xc82   : > { %v2387_v17 = vsel %vm2385_vm15, %v3282_v58, %v2282_v9  ;;  %v2283_v62 = vsel %vm2281_vm0, %v3282_v58, %v2282_v9 }
 0xc83   : > { %v2391_v4 = vsel %vm2384_vm6, %v2387_v17, %v2390_v24  ;;  %v2287_v6 = vsel %vm2280_vm8, %v2283_v62, %v2286_v55 }
 0xc84   : > { %v2392_v15 = vsel %vm2278_vm1, nan, %v2391_v4  ;;  %v2288_v10 = vsel %vm2278_vm1, nan, %v2287_v6 }
 0xc85   : > { %2428 = vrot.lane.b32.xlu1 %v2392_v15, %s3364_s17  ;;  %2423 = vrot.lane.b32.xlu0 %v2288_v10, %s3365_s3 }
 0xc89   : > { %2444 = vrot.lane.b32.xlu1 %v2392_v15, %s3365_s3  ;;  %2472 = vrot.lane.b32.xlu0 %v3807_v60, %s3366_s2 }
 0xc8d   : > { %2448 = vrot.lane.b32.xlu1 %v2288_v10, %s3364_s17  ;;  %2476 = vrot.lane.b32.xlu0 %v3803_v59, %s3367_s22 }
 0xc91   : > { %2492 = vrot.lane.b32.xlu1 %v3803_v59, %s3366_s2  ;;  %2512 = vrot.lane.b32.xlu0 %v2288_v10, %s3368_s23 }
 0xc95   : > { %2496 = vrot.lane.b32.xlu1 %v3807_v60, %s3367_s22  ;;  %2516 = vrot.lane.b32.xlu0 %v2392_v15, %s3369_s27 }
 0xc99   : > { %2536 = vrot.lane.b32.xlu1 %v2288_v10, %s3369_s27  ;;  %2532 = vrot.lane.b32.xlu0 %v2392_v15, %s3368_s23 }
 0xcf7   : > { %v2429_v43 = vpop.permute.xlu1 %2428  ;;  %v2424_v46 = vpop.permute.xlu0 %2423 }
 0xcfb   : > { %v2445_v48 = vpop.permute.xlu1 %2444 }
 0xcff   : > { %v2449_v21 = vpop.permute.xlu1 %2448 }
 0xd03   : > { %v2493_v11 = vpop.permute.xlu1 %2492 }
 0xd07   : > { %v1640_v19 = vpop.f32.mrb[0].mxu0  ;;  %v2497_v8 = vpop.permute.xlu1 %2496 }
 0xd08   : > { %v1653_v12 = vpack.c.bf16 %v1640_v19, %v1640_v19  ;;  %v3096_v13 = vpop.f32.mrb[1].mxu0 }
 0xd09   : > { %v1643_v14 = vpop.f32.mrb[2].mxu0 }
 0xd0a   : > { %v3097_v16 = vpop.f32.mrb[3].mxu0  ;;  %3103 = vmatmul.mubr.msk.bf16.vlgmr.msra.gmra.mrb[0].mxu1 %vm765_vm4, %v1653_v12 }
 0xd0b   : > { %3115 = vmatpush3.bf16.msra.mxu1 %v3715_v26  ;;  %3116 = vmatprep.mubr.msk.bf16.mxu1 %vm3356_vm11, %v3355_v51  ;;  %v2537_v55 = vpop.permute.xlu1 %2536 }
 0xd0c   : > { %3126 = vmatprep.subr.bf16.mxu1 %v3355_v51 }
 0xd12   : > { %3117 = vmatmul.mubr.msk.bf16.vlgmr.msra.gmra.mrb[4].mxu1 %vm1314_vm9, %v3811_v63 }
 0xd13   : > { %3127 = vmatpush3.bf16.msra.mxu1 %v1912_v36  ;;  %3130 = vmatprep.mubr.msk.bf16.mxu1 %vm3356_vm11, %v3355_v51 }
 0xd14   : > { %3128 = vmatprep.subr.bf16.mxu1 %v3355_v51 }
 0xd17   : > { %3129 = vmatpush3.bf16.msra.mxu1 %v1913_v20 }
 0xddd   : > { %v1703_v26 = vpop.f32.mrb[0].mxu1 }
 0xdde   : > { %v1704_v25 = vadd.f32 %v1703_v26, %v3699_v18  ;;  %v3104_v45 = vpop.f32.mrb[1].mxu1 }
 0xddf   : > { %v1706_v23 = vpop.f32.mrb[2].mxu1 }
 0xde0   : > { %v1709_v27 = vpack.c.bf16 %v1704_v25, %v1704_v25  ;;  %v3105_v47 = vpop.f32.mrb[3].mxu1 }
 0xde2   : > { %3111 = vmatmul.mubr.msk.bf16.vlgmr.msra.gmra.mrb[4].mxu0 %vm765_vm4, %v1709_v27 }
 0xde3   : > { %3121 = vmatpush3.bf16.msra.mxu0 %v3737_v42  ;;  %3122 = vmatprep.mubr.msk.bf16.mxu0 %vm3356_vm11, %v3355_v51 }
 0xde5   : > { %v1834_v63 = vpop.f32.mrb[4].mxu1 }
 0xde6   : > { %v1835_v49 = vadd.f32 %v1834_v63, %v3735_v40  ;;  %v3118_v0 = vpop.f32.mrb[5].mxu1 }
 0xde7   : > { %v1837_v2 = vpop.f32.mrb[6].mxu1 }
 0xde8   : > { %v1840_v35 = vpack.c.bf16 %v1835_v49, %v1835_v49  ;;  %v3119_v28 = vpop.f32.mrb[7].mxu1 }
 0xdea   : > { %3123 = vmatmul.mubr.msk.bf16.vlgmr.msra.gmra.mrb[8].mxu0 %vm1314_vm9, %v1840_v35  ;;  %vm2704_vm9 = vcmask 2048  }
 0xeb5   : > { %v1753_v18 = vpop.f32.mrb[4].mxu0 }
 0xeb6   : > { %v3112_v42 = vpop.f32.mrb[5].mxu0  ;;  %v1762_v51 = vrot.slane %v1753_v18, %v3572_v22  ;;  %v2473_v22 = vpop.permute.xlu0 %2472 }
 0xeb7   : > { %v1756_v29 = vpop.f32.mrb[6].mxu0 }
 0xeb8   : > { %v3113_v31 = vpop.f32.mrb[7].mxu0 }
 0xeba   : > { %v2477_v3 = vpop.permute.xlu0 %2476 }
 0xebd   : > { %v1881_v32 = vpop.f32.mrb[8].mxu0 }
 0xebe   : > { %v1887_v40 = vadd.f32 %v1881_v32, %v1762_v51  ;;  %v3124_v33 = vpop.f32.mrb[9].mxu0  ;;  %v2513_v57 = vpop.permute.xlu0 %2512 }
 0xebf   : > { %v1884_v34 = vpop.f32.mrb[10].mxu0 }
 0xec0   : > { %v1891_v39 = vadd.f32 %v3739_v44, %v1887_v40  ;;  %v3125_v37 = vpop.f32.mrb[11].mxu0 }
 0xec2   : > { %v1892_v38 = vpack.c.bf16 %v1891_v39, %v1891_v39  ;;  %v2517_v61 = vpop.permute.xlu0 %2516 }
 0xec4   : > { %3131 = vmatmul.mubr.msk.bf16.vlgmr.msra.gmra.mrb[8].mxu1 %vm765_vm4, %v1892_v38  ;;  %vm2404_vm4 = vcmask 67584  }
 0xec6   : > { %v2533_v6 = vpop.permute.xlu0 %2532 }
 0xf97   : > { %v1959_v30 = vpop.f32.mrb[8].mxu1 }
 0xf98   : > { %v3904_v53 = vadd.f32 %v1959_v30, %v1920_v50  ;;  %v3132_v54 = vpop.f32.mrb[9].mxu1 }
 0xf99   : > { %v1962_v56 = vpop.f32.mrb[10].mxu1 }
 0xf9a   : > { %2615 = vrot.lane.b32.xlu1 %v3904_v53, %s3370_s7  ;;  %2570 = vrot.lane.b32.xlu0 %v3904_v53, %s3363_s21  ;;  %v3133_v44 = vpop.f32.mrb[11].mxu1  ;;  %v2398_v1 = vmul.f32 %v2396_v7, %v3904_v53  ;;  %v2413_v52 = vmul.f32 %v2411_v41, %v3904_v53  ;;  %v2431_v5 = vmul.f32 %v2429_v43, %v3904_v53 }
 0xf9b   : > { %v2451_v58 = vmul.f32 %v2449_v21, %v3904_v53  ;;  %v2519_v9 = vmul.f32 %v2517_v61, %v3904_v53  ;;  %v2479_v24 = vmul.f32 %v2477_v3, %v3904_v53  ;;  %v2539_v17 = vmul.f32 %v2537_v55, %v3904_v53 }
 0xf9c   : > { %v2499_v62 = vmul.f32 %v2497_v8, %v3904_v53  ;;  %v2560_v4 = vmul.f32 %v3904_v53, %v3904_v53  ;;  %v2426_v26 = vmul.f32 %v2424_v46, %v3904_v53  ;;  %v2447_v25 = vmul.f32 %v2445_v48, %v3904_v53 }
 0xf9d   : > { %v2475_v63 = vmul.f32 %v2473_v22, %v3904_v53  ;;  %v2515_v35 = vmul.f32 %v2513_v57, %v3904_v53  ;;  %v2495_v28 = vmul.f32 %v2493_v11, %v3904_v53  ;;  %v2535_v32 = vmul.f32 %v2533_v6, %v3904_v53 }
 0xf9e   : > { %2599 = vrot.lane.b32.xlu0 %v3904_v53, %s3371_s14  ;;  %2400 = vrot.lane.b32.xlu1 %v2398_v1, %s3372_s20  ;;  %v2393_v37 = vmul.f32 %v3807_v60, %v3904_v53  ;;  %v2408_v7 = vmul.f32 %v3803_v59, %v3904_v53 }
 0xfa2   : > { %2611 = vrot.lane.b32.xlu0 %v3904_v53, %s3366_s2  ;;  %2415 = vrot.lane.b32.xlu1 %v2413_v52, %s3372_s20 }
 0xfa6   : > { %2433 = vrot.lane.b32.xlu0 %v2431_v5, %s3372_s20  ;;  %2453 = vrot.lane.b32.xlu1 %v2451_v58, %s3372_s20 }
 0xfaa   : > { %2521 = vrot.lane.b32.xlu0 %v2519_v9, %s3372_s20  ;;  %2481 = vrot.lane.b32.xlu1 %v2479_v24, %s3372_s20 }
 0xfae   : > { %2541 = vrot.lane.b32.xlu0 %v2539_v17, %s3372_s20  ;;  %2501 = vrot.lane.b32.xlu1 %v2499_v62, %s3372_s20 }
 0xfb2   : > { %2562 = vrot.lane.b32.xlu1 %v2560_v4, %s3372_s20 }
0x100c   : > { %v2616_v15 = vpop.permute.xlu1 %2615  ;;  %v2571_v10 = vpop.permute.xlu0 %2570 }
0x100d   : > { %v3934_v19 = vmul.f32 %v2616_v15, %v3904_v53  ;;  %v2573_v42 = vmul.f32 %v2571_v10, %v3904_v53 }
0x100f   : > { %2620 = vrot.lane.b32.xlu0 %v3934_v19, %s3363_s21  ;;  %s3373_s21 = smov 92   ;;  %v2574_v40 = vsub.f32 %v2573_v42, %v2573_v42 }
0x1010   : > { %v2600_v12 = vpop.permute.xlu0 %2599  ;;  %v2401_v13 = vpop.permute.xlu1 %2400 }
0x1011   : > { %v2602_v14 = vmul.f32 %v2600_v12, %v3904_v53  ;;  %v2403_v38 = vsub.f32 %v2393_v37, %v2401_v13 }
0x1013   : > { %2604 = vrot.lane.b32.xlu1 %v2602_v14, %s3372_s20  ;;  %v2405_v41 = vsel %vm2404_vm4, %v2403_v38, 0.0 }
0x1014   : > { %v2612_v16 = vpop.permute.xlu0 %2611  ;;  %v2416_v36 = vpop.permute.xlu1 %2415 }
0x1015   : > { %v2614_v20 = vmul.f32 %v2612_v16, %v3904_v53  ;;  %v2418_v43 = vadd.f32 %v2416_v36, %v2408_v7 }
0x1017   : > { %2649 = vrot.lane.b32.xlu1 %v2614_v20, %s3372_s20  ;;  %v2419_v46 = vsel %vm2404_vm4, %v2418_v43, 0.0 }
0x1018   : > { %v2434_v45 = vpop.permute.xlu0 %2433  ;;  %v2454_v23 = vpop.permute.xlu1 %2453 }
0x1019   : > { %v2436_v27 = vsub.f32 %v2426_v26, %v2434_v45  ;;  %v2456_v47 = vadd.f32 %v2454_v23, %v2447_v25 }
0x101b   : > { %2438 = vrot.lane.b32.xlu0 %v2436_v27, %s3373_s21  ;;  %2458 = vrot.lane.b32.xlu1 %v2456_v47, %s3373_s21 }
0x101c   : > { %v2522_v49 = vpop.permute.xlu0 %2521  ;;  %v2482_v0 = vpop.permute.xlu1 %2481 }
0x101d   : > { %v2484_v2 = vsub.f32 %v2475_v63, %v2482_v0  ;;  %v2524_v29 = vsub.f32 %v2515_v35, %v2522_v49 }
0x101f   : > { %2486 = vrot.lane.b32.xlu0 %v2484_v2, %s3371_s14 }
0x1020   : > { %v2502_v18 = vpop.permute.xlu1 %2501  ;;  %v2542_v51 = vpop.permute.xlu0 %2541 }
0x1021   : > { %v2504_v31 = vadd.f32 %v2502_v18, %v2495_v28  ;;  %v2544_v33 = vadd.f32 %v2542_v51, %v2535_v32 }
0x1023   : > { %2526 = vrot.lane.b32.xlu0 %v2524_v29, %s3374_s26  ;;  %2506 = vrot.lane.b32.xlu1 %v2504_v31, %s3371_s14 }
0x1024   : > { %v2563_v34 = vpop.permute.xlu1 %2562 }
0x1025   : > { %v2565_v39 = vadd.f32 %v2563_v34, %v2560_v4 }
0x1027   : > { %2546 = vrot.lane.b32.xlu0 %v2544_v33, %s3374_s26  ;;  %2576 = vrot.lane.b32.xlu1 %v2574_v40, %s3372_s20  ;;  %v2566_v48 = vsel %vm2404_vm4, %v2565_v39, 0.0 }
0x102b   : > { %2589 = vrot.lane.b32.xlu0 %v2574_v40, %s3375_s28  ;;  %2583 = vrot.lane.b32.xlu1 %v2565_v39, %s3373_s21 }
0x104a   : > { %2406 = vadd.xlane.f32.xlu0 %v2405_v41 }
0x104f   : > { %2420 = vadd.xlane.f32.xlu1 %v2419_v46 }
0x1053   : > { %2567 = vadd.xlane.f32.xlu1 %v2566_v48 }
0x1081   : > { %v2621_v50 = vpop.permute.xlu0 %2620 }
0x1082   : > { %v2623_v22 = vsub.f32 %v2614_v20, %v2621_v50 }
0x1084   : > { %2625 = vrot.lane.b32.xlu0 %v2623_v22, %s3372_s20 }
0x1085   : > { %v2605_v60 = vpop.permute.xlu1 %2604 }
0x1086   : > { %v2607_v30 = vadd.f32 %v2605_v60, %v2602_v14 }
0x1088   : > { %2632 = vrot.lane.b32.xlu1 %v2607_v30, %s3373_s21  ;;  %2666 = vrot.lane.b32.xlu0 %v2565_v39, %s3371_s14  ;;  %v2608_v4 = vsel %vm2404_vm4, %v2607_v30, 0.0 }
0x1089   : > { %v2650_v59 = vpop.permute.xlu1 %2649 }
0x108a   : > { %v2652_v53 = vsub.f32 %v3934_v19, %v2650_v59 }
0x108c   : > { %2657 = vrot.lane.b32.xlu1 %v2652_v53, %s3373_s21  ;;  %2638 = vrot.lane.b32.xlu0 %v2623_v22, %s3375_s28  ;;  %v2653_v26 = vsel %vm2404_vm4, %v2652_v53, 0.0 }
0x108d   : > { %v2439_v54 = vpop.permute.xlu0 %2438  ;;  %v2459_v44 = vpop.permute.xlu1 %2458 }
0x108e   : > { %v2441_v3 = vsel %vm2404_vm4, %v2439_v54, 0.0  ;;  %v2461_v52 = vsel %vm2404_vm4, %v2459_v44, 0.0 }
0x1090   : > { %2684 = vrot.lane.b32.xlu1 %v2574_v40, %s3376_s30  ;;  %2678 = vrot.lane.b32.xlu0 %v2565_v39, %s3374_s26 }
0x1091   : > { %v2487_v56 = vpop.permute.xlu0 %2486 }
0x1092   : > { %v2489_v57 = vsel %vm2404_vm4, %v2487_v56, 0.0 }
0x1094   : > { %2672 = vrot.lane.b32.xlu0 %v2574_v40, %s3370_s7 }
0x1095   : > { %v2507_v21 = vpop.permute.xlu1 %2506  ;;  %v2527_v1 = vpop.permute.xlu0 %2526 }
0x1096   : > { %v2509_v58 = vsel %vm2404_vm4, %v2507_v21, 0.0  ;;  %v2529_v61 = vsel %vm2404_vm4, %v2527_v1, 0.0 }
0x1099   : > { %v2577_v11 = vpop.permute.xlu1 %2576  ;;  %v2547_v5 = vpop.permute.xlu0 %2546 }
0x109a   : > { %v2549_v8 = vsel %vm2404_vm4, %v2547_v5, 0.0  ;;  %v2579_v24 = vsel %vm2404_vm4, %v2577_v11, 0.0 }
0x109d   : > { %v2584_v9 = vpop.permute.xlu1 %2583  ;;  %v2590_v55 = vpop.permute.xlu0 %2589 }
0x109e   : > { %v2586_v17 = vsel %vm2404_vm4, %v2584_v9, 0.0  ;;  %v2592_v62 = vsel %vm2404_vm4, %v2590_v55, 0.0 }
0x10b3   : > { %2442 = vadd.xlane.f32.xlu0 %v2441_v3 }
0x10b4   : > { %2462 = vadd.xlane.f32.xlu1 %v2461_v52 }
0x10b7   : > { %2490 = vadd.xlane.f32.xlu0 %v2489_v57 }
0x10b8   : > { %2510 = vadd.xlane.f32.xlu1 %v2509_v58 }
0x10bb   : > { %2550 = vadd.xlane.f32.xlu0 %v2549_v8 }
0x10bc   : > { %2530 = vadd.xlane.f32.xlu1 %v2529_v61 }
0x10bf   : > { %2580 = vadd.xlane.f32.xlu0 %v2579_v24 }
0x10c0   : > { %2587 = vadd.xlane.f32.xlu1 %v2586_v17 }
0x10c3   : > { %2593 = vadd.xlane.f32.xlu0 %v2592_v62 }
0x10c4   : > { %2609 = vadd.xlane.f32.xlu1 %v2608_v4 }
0x10d7   : > { %v2407_v15 = vpop.xlane.xlu0 %2406 }
0x10dc   : > { %v2421_v6 = vpop.xlane.xlu1 %2420 }
0x10e0   : > { %v2568_v10 = vpop.xlane.xlu1 %2567 }
0x10f6   : > { %v2626_v19 = vpop.permute.xlu0 %2625 }
0x10f7   : > { %v2628_v12 = vsel %vm2404_vm4, %v2626_v19, 0.0 }
0x10f8   : > { %2629 = vadd.xlane.f32.xlu0 %v2628_v12 }
0x10fa   : > { %v2633_v13 = vpop.permute.xlu1 %2632  ;;  %v2667_v14 = vpop.permute.xlu0 %2666 }
0x10fb   : > { %v2635_v16 = vsel %vm2404_vm4, %v2633_v13, 0.0  ;;  %v2669_v36 = vsel %vm2404_vm4, %v2667_v14, 0.0 }
0x10fc   : > { %2636 = vadd.xlane.f32.xlu1 %v2635_v16  ;;  %2670 = vadd.xlane.f32.xlu0 %v2669_v36 }
0x10fe   : > { %v2639_v20 = vpop.permute.xlu0 %2638  ;;  %v2658_v45 = vpop.permute.xlu1 %2657 }
0x10ff   : > { %v2641_v25 = vsel %vm2404_vm4, %v2639_v20, 0.0  ;;  %v2660_v27 = vsel %vm2404_vm4, %v2658_v45, 0.0 }
0x1100   : > { %2654 = vadd.xlane.f32.xlu1 %v2653_v26  ;;  %2642 = vadd.xlane.f32.xlu0 %v2641_v25 }
0x1102   : > { %v2679_v23 = vpop.permute.xlu0 %2678  ;;  %v2685_v0 = vpop.permute.xlu1 %2684 }
0x1103   : > { %v2681_v63 = vsel %vm2404_vm4, %v2679_v23, 0.0  ;;  %v2687_v2 = vsel %vm2404_vm4, %v2685_v0, 0.0 }
0x1104   : > { %2661 = vadd.xlane.f32.xlu0 %v2660_v27 }
0x1106   : > { %v2673_v47 = vpop.permute.xlu0 %2672 }
0x1107   : > { %v2675_v49 = vsel %vm2404_vm4, %v2673_v47, 0.0 }
0x1108   : > { %2682 = vadd.xlane.f32.xlu0 %v2681_v63  ;;  %2676 = vadd.xlane.f32.xlu1 %v2675_v49 }
0x110c   : > { %2688 = vadd.xlane.f32.xlu1 %v2687_v2 }
0x1140   : > { %v2443_v35 = vpop.xlane.xlu0 %2442 }
0x1141   : > { %v2463_v28 = vpop.xlane.xlu1 %2462  ;;  %v2464_v1 = vmul.f32 %v2443_v35, %v2407_v15  ;;  %v2470_v3 = vmul.f32 %v2443_v35, %v2421_v6 }
0x1142   : > { %v2466_v52 = vmul.f32 %v2463_v28, %v2421_v6  ;;  %v2468_v11 = vmul.f32 %v2463_v28, %v2407_v15 }
0x1144   : > { %v2491_v18 = vpop.xlane.xlu0 %2490  ;;  %v2467_v24 = vsub.f32 %v2464_v1, %v2466_v52  ;;  %v2471_v55 = vadd.f32 %v2470_v3, %v2468_v11 }
0x1145   : > { %v2511_v42 = vpop.xlane.xlu1 %2510 }
0x1148   : > { %v2551_v29 = vpop.xlane.xlu0 %2550 }
0x1149   : > { %v2531_v31 = vpop.xlane.xlu1 %2530  ;;  %v2556_v8 = vmul.f32 %v2551_v29, %v2491_v18  ;;  %v2554_v12 = vmul.f32 %v2551_v29, %v2511_v42 }
0x114a   : > { %v2552_v61 = vmul.f32 %v2531_v31, %v2491_v18 }
0x114b   : > { %v2557_v62 = vadd.f32 %v2556_v8, %v2471_v55 }
0x114c   : > { %v2581_v51 = vpop.xlane.xlu0 %2580  ;;  %v2553_v4 = vadd.f32 %v2552_v61, %v2467_v24 }
0x114d   : > { %v2588_v32 = vpop.xlane.xlu1 %2587 }
0x114e   : > { %v2595_v7 = vmul.f32 %v2588_v32, %v2568_v10  ;;  %v2558_v10 = vmul.f32 %v2531_v31, %v2511_v42  ;;  %v2555_v13 = vsub.f32 %v2553_v4, %v2554_v12 }
0x1150   : > { %v2594_v40 = vpop.xlane.xlu0 %2593  ;;  %v2559_v14 = vadd.f32 %v2558_v10, %v2557_v62  ;;  %v2695_v6 = vmul.f32 %v2555_v13, %v2555_v13 }
0x1151   : > { %v2610_v33 = vpop.xlane.xlu1 %2609  ;;  %v2597_v39 = vmul.f32 %v2594_v40, %v2581_v51 }
0x1152   : > { %v2696_v15 = vmul.f32 %v2559_v14, %v2559_v14 }
0x1153   : > { %v2598_v43 = vsub.f32 %v2595_v7, %v2597_v39 }
0x1154   : > { %v2697_v16 = vadd.f32 %v2696_v15, %v2695_v6 }
0x1185   : > { %v2630_v34 = vpop.xlane.xlu0 %2629 }
0x1189   : > { %v2637_v37 = vpop.xlane.xlu1 %2636  ;;  %v2671_v38 = vpop.xlane.xlu0 %2670 }
0x118a   : > { %v2644_v41 = vmul.f32 %v2637_v37, %v2610_v33 }
0x118c   : > { %v2645_v48 = vadd.f32 %v2644_v41, %v2598_v43 }
0x118d   : > { %v2643_v46 = vpop.xlane.xlu0 %2642  ;;  %v2655_v60 = vpop.xlane.xlu1 %2654 }
0x118e   : > { %v2646_v50 = vmul.f32 %v2643_v46, %v2630_v34 }
0x1190   : > { %v2647_v22 = vsub.f32 %v2645_v48, %v2646_v50 }
0x1191   : > { %v2662_v30 = vpop.xlane.xlu0 %2661 }
0x1192   : > { %v2663_v59 = vadd.f32 %v2647_v22, %v2644_v41  ;;  %v2664_v53 = vmul.f32 %v2662_v30, %v2655_v60 }
0x1194   : > { %v2665_v21 = vsub.f32 %v2663_v59, %v2664_v53 }
0x1195   : > { %v2677_v54 = vpop.xlane.xlu1 %2676  ;;  %v2683_v56 = vpop.xlane.xlu0 %2682 }
0x1196   : > { %v2690_v44 = vmul.f32 %v2683_v56, %v2671_v38 }
0x1198   : > { %v2691_v5 = vadd.f32 %v2690_v44, %v2665_v21 }
0x1199   : > { %v2689_v57 = vpop.xlane.xlu1 %2688 }
0x119a   : > { %v2692_v58 = vmul.f32 %v2689_v57, %v2677_v54 }
0x119c   : > { %v2693_v9 = vsub.f32 %v2691_v5, %v2692_v58 }
0x119e   : > { %v2694_v17 = vmax.f32 %v2693_v9, 1e-12 }
0x11a0   : > { %v2698_v19 = vmul.f32 4.0, %v2694_v17 }
0x11a2   : > { %3285 = vrcp.f32 %v2698_v19 }
0x11ac   : > { %v3286_v36 = vpop.eup %3285 }
0x11ad   : > { %v2700_v20 = vmul.f32 %v3286_v36, %v2697_v16 }
0x11af   : > { %v2701_v26 = vmax.f32 %v2700_v20, 1e-37 }
0x11b1   : > { %3287 = vlog2.f32 %v2701_v26 }
0x11bb   : > { %v3288_v25 = vpop.eup %3287 }
0x11bc   : > { %v2703_v45 = vmul.f32 0.6931472, %v3288_v25 }
0x11be   : > { %2705 = vst.msk [vmem:[%s673_s13] sm:$0x7] %vm2704_vm9, %v2703_v45 }
0x11bf PF: > { %s4055_s12 = sld [smem:[#allocation5_spill]]  ;;  %s4056_s20 = sld [smem:[#allocation3_spill]] }
0x11c0   : > { %s4057_s21 = sld [smem:[#allocation4_spill]]  ;;  %s4058_s22 = sld [smem:[#allocation6_spill]] }
0x11c1   : > { %s4059_s3 = sld [smem:[#allocation7_spill]] }
0x11c5   : > { %s26_s23 = sadd.s32 1, %s4055_s12  }
0x11c6   : > { %p23_p9 = scmp.ge.s32.totalorder %s26_s23, 6  }
0x11c8   :  { %25 = sbr.rel (!%p23_p9) target bundleno = 7 (0x7), region = 146 }

</bundles_post_ra>
